<compile_context>
chip_gen: v7x
topology: tpu7x:2x2x1
jax: 0.10.0
libtpu: 0.0.40
codegen_flags: <defaults>
</compile_context>

<pallas_src>
import jax
import jax.numpy as jnp
from jax.experimental import pallas as pl
from jax.experimental.pallas import tpu as pltpu

LANE = 128
SUBLANE = 8


def _round_up(x, m):
    return ((x + m - 1) // m) * m


def _vmem_limit_bytes():
    # ~96 MiB on v5e/v6e (128 MiB physical), ~48 MiB on v7x (64 MiB physical).
    try:
        cap = pltpu.get_tpu_info().vmem_capacity_bytes
        return int(min(cap * 3 // 4, 100 * 1024 * 1024))
    except Exception:
        return 32 * 1024 * 1024


def _chunk_size(s, target=16):
    ts = 1
    for d in range(1, min(s, target) + 1):
        if s % d == 0:
            ts = d
    return ts


def _pad2(a, rows, cols):
    return jnp.pad(a, ((0, rows - a.shape[0]), (0, cols - a.shape[1])))


def _pad_gates(w, hp):
    """Pad a fused-gate 2D weight/bias [..., 3H] -> [..., 3Hp] per gate block."""
    h = w.shape[-1] // 3
    parts = [jnp.pad(w[:, g * h:(g + 1) * h], ((0, 0), (0, hp - h))) for g in range(3)]
    return jnp.concatenate(parts, axis=-1)


# ----------------------------- Encoder kernel ------------------------------
# Grid over S chunks ("arbitrary"); hidden state carried in VMEM scratch.
# Per chunk: one batched input-gate matmul, fully unrolled h-recurrence, and the
# hoisted attention key projection enc_out @ Wae.

def _encoder_kernel(x_ref, wx_ref, wh_ref, b_ref, wae_ref,
                    out_ref, hlast_ref, encproj_ref, h_scr):
    c = pl.program_id(0)
    ts, B, _ = x_ref.shape
    Hp = h_scr.shape[1]

    @pl.when(c == 0)
    def _():
        h_scr[...] = jnp.zeros_like(h_scr)

    # Batched input-side gate matmul for the whole chunk (bf16 MXU, f32 accum).
    gx = jnp.dot(x_ref[...].reshape(ts * B, -1), wx_ref[...],
                 preferred_element_type=jnp.float32) + b_ref[...]
    gx = gx.reshape(ts, B, 3 * Hp)

    # Fully unrolled recurrence (ts kept small) so adjacent iterations' MXU push /
    # VPU gate math / stores interleave.
    h = h_scr[...]
    for s in range(ts):
        g_x = gx[s]
        g_h = jnp.dot(h.astype(jnp.bfloat16), wh_ref[...],
                      preferred_element_type=jnp.float32)
        z = jax.nn.sigmoid(g_x[:, :Hp] + g_h[:, :Hp])
        r = jax.nn.sigmoid(g_x[:, Hp:2 * Hp] + g_h[:, Hp:2 * Hp])
        n = jnp.tanh(g_x[:, 2 * Hp:] + r * g_h[:, 2 * Hp:])
        h = (1.0 - z) * n + z * h
        out_ref[s] = h.astype(out_ref.dtype)

    h_scr[...] = h
    hlast_ref[...] = h

    # Hoisted attention key projection for this chunk (reused by every decode step).
    proj = jnp.dot(out_ref[...].reshape(ts * B, Hp), wae_ref[...],
                   preferred_element_type=jnp.float32)
    encproj_ref[...] = proj.reshape(ts, B, -1).astype(encproj_ref.dtype)


def encoder_forward(x_emb, wx, wh, b, wae):
    # x_emb: [S, B, Ep] bf16, time-major, batch already padded to a sublane multiple.
    S, B, Ep = x_emb.shape
    Hp = wh.shape[0]
    Ap = wae.shape[1]
    ts = _chunk_size(S)

    enc_out, h_last, enc_proj = pl.pallas_call(
        _encoder_kernel,
        out_shape=(jax.ShapeDtypeStruct((S, B, Hp), jnp.bfloat16),
                   jax.ShapeDtypeStruct((B, Hp), jnp.float32),
                   jax.ShapeDtypeStruct((S, B, Ap), jnp.bfloat16)),
        grid_spec=pltpu.PrefetchScalarGridSpec(
            num_scalar_prefetch=0,
            grid=(S // ts,),
            in_specs=[pl.BlockSpec((ts, B, Ep), lambda c: (c, 0, 0)),
                      pl.BlockSpec(wx.shape, lambda c: (0, 0)),
                      pl.BlockSpec(wh.shape, lambda c: (0, 0)),
                      pl.BlockSpec(b.shape, lambda c: (0, 0)),
                      pl.BlockSpec(wae.shape, lambda c: (0, 0))],
            out_specs=(pl.BlockSpec((ts, B, Hp), lambda c: (c, 0, 0)),
                       pl.BlockSpec((B, Hp), lambda c: (0, 0)),
                       pl.BlockSpec((ts, B, Ap), lambda c: (c, 0, 0))),
            scratch_shapes=[pltpu.VMEM((B, Hp), jnp.float32)],
        ),
        compiler_params=pltpu.CompilerParams(
            dimension_semantics=("arbitrary",),     # sequential recurrence in scratch
            vmem_limit_bytes=_vmem_limit_bytes(),
        ),
    )(x_emb, wx, wh, b, wae)
    return enc_out, h_last, enc_proj


# --------------------------- Fused decoder kernel ----------------------------
# One grid step == one decode timestep.  Hidden state, previous argmax token and the
# column iota are carried in VMEM scratch; every weight / enc_out / enc_proj / token
# table uses a constant index map so it stays VMEM-resident for the whole decode.
# Teacher-force flags are scalar-prefetched into SMEM.

def _decoder_seq_kernel(tf_ref,                                   # SMEM (T+1,) int32
                        trg_ref,                                  # VMEM (T, B, 1) int32 (resident)
                        h0_ref, enc_ref, encproj_ref, emb_ref,
                        wah_ref, ba_ref, va_ref,
                        w_in_ref, w_hh_ref, b_g_ref,
                        w_out_ref, bo_ref,
                        pred_ref,                                 # (1, B, Vp) f32
                        h_scr, tok_scr, iota_scr):
    i = pl.program_id(0)
    B, Hp = h_scr.shape
    Vp = iota_scr.shape[1]

    @pl.when(i == 0)
    def _():
        h_scr[...] = h0_ref[...]
        tok_scr[...] = jnp.zeros_like(tok_scr)
        iota_scr[...] = jax.lax.broadcasted_iota(jnp.int32, iota_scr.shape, 1)

    # --- decoder input token: teacher-forced target vs previous argmax -------
    sel = tf_ref[i]                                                  # 0/1 scalar (SMEM)
    tok = sel * trg_ref[i] + (1 - sel) * tok_scr[...]                # (B, 1) int32
    in_oh = (iota_scr[...] == tok).astype(jnp.bfloat16)              # (B, Vp)

    # Embedding lookup as one-hot matmul on the MXU.
    emb = jnp.dot(in_oh, emb_ref[...], preferred_element_type=jnp.float32)   # (B, Ep) f32
    h = h_scr[...]                                                            # (B, Hp) f32
    h_bf = h.astype(jnp.bfloat16)
    emb_bf = emb.astype(jnp.bfloat16)

    # --- Bahdanau attention (keys pre-projected in the encoder epilogue) -----
    h_proj = jnp.dot(h_bf, wah_ref[...],
                     preferred_element_type=jnp.float32) + ba_ref[...]        # (B, Ap)
    energy = jnp.tanh(encproj_ref[...] + h_proj[None])                        # (S, B, Ap) f32
    scores = jnp.sum(energy * va_ref[...][None], axis=2, keepdims=True)       # (S, B, 1)
    m = jnp.max(scores, axis=0, keepdims=True)
    e = jnp.exp(scores - m)
    den = jnp.sum(e, axis=0, keepdims=True)
    attn = e * pl.reciprocal(den, approx=True)                                # (S, B, 1)
    context = jnp.sum(attn * enc_ref[...], axis=0)                            # (B, Hp) f32
    ctx_bf = context.astype(jnp.bfloat16)

    # --- GRU cell: fused input-side gates [emb ; ctx] @ W_in ------------------
    xc = jnp.concatenate([emb_bf, ctx_bf], axis=1)                            # (B, Ep+Hp)
    gi = jnp.dot(xc, w_in_ref[...], preferred_element_type=jnp.float32) + b_g_ref[...]
    gh = jnp.dot(h_bf, w_hh_ref[...], preferred_element_type=jnp.float32)     # (B, 3Hp)
    z = jax.nn.sigmoid(gi[:, :Hp] + gh[:, :Hp])
    r = jax.nn.sigmoid(gi[:, Hp:2 * Hp] + gh[:, Hp:2 * Hp])
    n = jnp.tanh(gi[:, 2 * Hp:] + r * gh[:, 2 * Hp:])
    h_new = (1.0 - z) * n + z * h

    # --- fused output projection: [h_new ; ctx ; emb] @ W_out + bo ------------
    oc = jnp.concatenate([h_new.astype(jnp.bfloat16), ctx_bf, emb_bf], axis=1)
    pred = jnp.dot(oc, w_out_ref[...], preferred_element_type=jnp.float32) + bo_ref[...]

    pred_ref[0] = pred
    h_scr[...] = h_new

    # Argmax feedback only when the next step actually consumes it (the tf flags
    # carry a trailing sentinel==1 so tf_ref[i+1] is always in range and the last
    # step always skips this block).  Padded logit columns carry -1e30 -> never win.
    @pl.when(tf_ref[i + 1] == 0)
    def _():
        mx = jnp.max(pred, axis=1, keepdims=True)
        col = iota_scr[...]
        tok_scr[...] = jnp.min(jnp.where(pred == mx, col, Vp), axis=1, keepdims=True)


def decoder_forward(tf_flags, trg_ids, h0, enc_out, enc_proj, dec_ops):
    T_dec, B, _ = trg_ids.shape
    Hp = h0.shape[1]
    Vp = dec_ops["w_out"].shape[1]

    inputs = [trg_ids, h0, enc_out, enc_proj,
              dec_ops["emb"], dec_ops["wah"], dec_ops["ba"], dec_ops["va"],
              dec_ops["w_in"], dec_ops["w_hh"], dec_ops["b_g"],
              dec_ops["w_out"], dec_ops["bo"]]

    def const_spec(a):
        return pl.BlockSpec(a.shape, lambda i, tf, nd=a.ndim: (0,) * nd)

    preds = pl.pallas_call(
        _decoder_seq_kernel,
        out_shape=jax.ShapeDtypeStruct((T_dec, B, Vp), jnp.float32),
        grid_spec=pltpu.PrefetchScalarGridSpec(
            num_scalar_prefetch=1,
            grid=(T_dec,),
            in_specs=[const_spec(a) for a in inputs],
            out_specs=pl.BlockSpec((1, B, Vp), lambda i, tf: (i, 0, 0)),
            scratch_shapes=[pltpu.VMEM((B, Hp), jnp.float32),
                            pltpu.VMEM((B, 1), jnp.int32),
                            pltpu.VMEM((B, Vp), jnp.int32)],
        ),
        compiler_params=pltpu.CompilerParams(
            dimension_semantics=("arbitrary",),     # recurrence carried in scratch
            vmem_limit_bytes=_vmem_limit_bytes(),
        ),
    )(tf_flags, *inputs)
    return preds


# ------------------------------ Seq2Seq forward -----------------------------

def seq2seq_forward(src, trg, params, max_sent_size, teacher_force_ratio=0.5,
                    rng=jax.random.PRNGKey(42)):
    B = src.shape[0]
    B_pad = _round_up(max(B, SUBLANE), SUBLANE)
    enc, dec = params["encoder"], params["decoder"]
    E = enc["emb"].shape[1]
    H = enc["wh"].shape[0]
    A = dec["wae"].shape[1]
    V = dec["woh"].shape[1]
    Ep, Hp, Ap, Vp = (_round_up(d, LANE) for d in (E, H, A, V))
    T_dec = max_sent_size - 1

    # pad batch to a full sublane tile (padded rows are independent garbage, sliced off)
    src_p = jnp.pad(src, ((0, B_pad - B), (0, 0)))
    trg_p = jnp.pad(trg, ((0, B_pad - B), (0, 0)))

    # ---- lane-aligned / fused / bf16 kernel operands (hoistable in a real loop).
    # Zero padding is exact: padded hidden/emb/attn dims stay identically zero.
    enc_emb = jnp.pad(enc["emb"], ((0, 0), (0, Ep - E))).astype(jnp.bfloat16)
    wx_p = _pad_gates(jnp.pad(enc["wx"], ((0, Ep - E), (0, 0))), Hp).astype(jnp.bfloat16)
    wh_p = _pad_gates(jnp.pad(enc["wh"], ((0, Hp - H), (0, 0))), Hp).astype(jnp.bfloat16)
    be_p = _pad_gates(enc["b"], Hp)                                       # f32 (1, 3Hp)
    wae_p = _pad2(dec["wae"], Hp, Ap).astype(jnp.bfloat16)

    dec_emb = _pad2(dec["emb"], Vp, Ep).astype(jnp.bfloat16)
    wah_p = _pad2(dec["wah"], Hp, Ap).astype(jnp.bfloat16)
    ba_p = jnp.pad(dec["ba"], ((0, 0), (0, Ap - A)))
    va_p = jnp.pad(dec["va"], ((0, 0), (0, Ap - A)))
    w_in_p = jnp.concatenate(                                             # [emb ; ctx] -> gates
        [_pad_gates(jnp.pad(dec["w_ie"], ((0, Ep - E), (0, 0))), Hp),
         _pad_gates(jnp.pad(dec["w_ic"], ((0, Hp - H), (0, 0))), Hp)],
        axis=0).astype(jnp.bfloat16)
    w_hh_p = _pad_gates(jnp.pad(dec["w_hh"], ((0, Hp - H), (0, 0))), Hp).astype(jnp.bfloat16)
    b_g_p = _pad_gates(dec["b_g"], Hp)                                    # f32 (1, 3Hp)
    w_out_p = jnp.concatenate(                                            # [h ; ctx ; emb] -> logits
        [_pad2(dec["woh"], Hp, Vp), _pad2(dec["woc"], Hp, Vp), _pad2(dec["woe"], Ep, Vp)],
        axis=0).astype(jnp.bfloat16)
    bo_p = jnp.pad(dec["bo"], ((0, 0), (0, Vp - V)), constant_values=-1e30)

    # ---- encoder ---------------------------------------------------------------
    x_emb = jnp.transpose(enc_emb[src_p], (1, 0, 2))                      # [S, B_pad, Ep] bf16
    enc_out, h_last, enc_proj = encoder_forward(x_emb, wx_p, wh_p, be_p, wae_p)

    # ---- decoder ---------------------------------------------------------------
    # token ids consumed at step s (s=0 always uses trg[:, 0]); batch on sublanes
    trg_ids = jnp.transpose(trg_p[:, :T_dec], (1, 0))[:, :, None].astype(jnp.int32)

    # deterministic stand-in for python `random()` per decoding step; trailing
    # sentinel==1 keeps tf[i+1] in range and disables argmax after the last step.
    tf_draws = jax.random.uniform(rng, (T_dec + 1,))
    tf_flags = (tf_draws < teacher_force_ratio).astype(jnp.int32)
    tf_flags = tf_flags.at[0].set(1)        # step 0 always consumes trg[:, 0]
    tf_flags = tf_flags.at[T_dec].set(1)    # sentinel

    dec_ops = dict(emb=dec_emb, wah=wah_p, ba=ba_p, va=va_p, w_in=w_in_p,
                   w_hh=w_hh_p, b_g=b_g_p, w_out=w_out_p, bo=bo_p)
    preds = decoder_forward(tf_flags, trg_ids, h_last, enc_out, enc_proj, dec_ops)
    return jnp.transpose(preds, (1, 0, 2))[:B, :, :V]                     # [B, T_dec, V]


# ------------------------------- Param init ---------------------------------
# Gate weights are stored fused along the output dim: [Wz | Wr | Wn] -> [., 3H].

def init_params(key, src_vocab, trg_vocab, emb_dim, hidden, attn_dim):
    keys = iter(jax.random.split(key, 24))

    def w(shape, scale=0.1):
        return jax.random.normal(next(keys), shape, dtype=jnp.float32) * scale

    enc = {
        "emb": w((src_vocab, emb_dim)),
        "wx": w((emb_dim, 3 * hidden)),     # [Wxz | Wxr | Wxn]
        "wh": w((hidden, 3 * hidden)),      # [Whz | Whr | Whn]
        "b":  w((1, 3 * hidden)),           # [bz  | br  | bn ]
    }
    dec = {
        "emb": w((trg_vocab, emb_dim)),
        "wah": w((hidden, attn_dim)), "wae": w((hidden, attn_dim)),
        "ba": w((1, attn_dim)), "va": w((1, attn_dim)),
        "w_ie": w((emb_dim, 3 * hidden)),   # emb     -> gates
        "w_ic": w((hidden, 3 * hidden)),    # context -> gates
        "w_hh": w((hidden, 3 * hidden)),    # hidden  -> gates
        "b_g":  w((1, 3 * hidden)),
        "woh": w((hidden, trg_vocab)), "woc": w((hidden, trg_vocab)),
        "woe": w((emb_dim, trg_vocab)), "bo": w((1, trg_vocab)),
    }
    return {"encoder": enc, "decoder": dec}


if __name__ == "__main__":
    B, S_src, max_sent_size = 2, 8, 6
    src_vocab, trg_vocab = 20, 24
    emb_dim, hidden, attn_dim = 16, 32, 16

    key = jax.random.PRNGKey(0)
    kp, ks, kt, ktf = jax.random.split(key, 4)
    params = init_params(kp, src_vocab, trg_vocab, emb_dim, hidden, attn_dim)
    src = jax.random.randint(ks, (B, S_src), 0, src_vocab, dtype=jnp.int32)
    trg = jax.random.randint(kt, (B, max_sent_size), 0, trg_vocab, dtype=jnp.int32)

    out = seq2seq_forward(src, trg, params, max_sent_size,
                          teacher_force_ratio=0.5, rng=ktf)
    out = jax.block_until_ready(out)
    assert out.shape == (B, max_sent_size - 1, trg_vocab)
    assert bool(jnp.all(jnp.isfinite(out)))
    print("KERNEL_OK")
</pallas_src>

<mosaic_0001>
module attributes {stable_mosaic.version = 11 : i64} {
  func.func @_encoder_kernel(%arg0: i32, %arg1: memref<8x8x128xbf16, #tpu.memory_space<vmem>>, %arg2: memref<128x384xbf16, #tpu.memory_space<vmem>>, %arg3: memref<128x384xbf16, #tpu.memory_space<vmem>>, %arg4: memref<1x384xf32, #tpu.memory_space<vmem>>, %arg5: memref<128x128xbf16, #tpu.memory_space<vmem>>, %arg6: memref<8x8x128xbf16, #tpu.memory_space<vmem>>, %arg7: memref<8x128xf32, #tpu.memory_space<vmem>>, %arg8: memref<8x8x128xbf16, #tpu.memory_space<vmem>>, %arg9: memref<8x128xf32, #tpu.memory_space<vmem>>) attributes {dimension_semantics = [#tpu.dimension_semantics<arbitrary>], iteration_bounds = array<i64: 1>, scalar_prefetch = 0 : i64, scratch_operands = 1 : i64, tpu.core_type = #tpu.core_type<tc>, window_params = [{transform_indices = @transform_0, window_bounds = array<i64: 8, 8, 128>}, {pipeline_mode = #tpu.pipeline_mode<synchronous>, transform_indices = @transform_1, window_bounds = array<i64: 128, 384>}, {pipeline_mode = #tpu.pipeline_mode<synchronous>, transform_indices = @transform_2, window_bounds = array<i64: 128, 384>}, {pipeline_mode = #tpu.pipeline_mode<synchronous>, transform_indices = @transform_3, window_bounds = array<i64: 1, 384>}, {pipeline_mode = #tpu.pipeline_mode<synchronous>, transform_indices = @transform_4, window_bounds = array<i64: 128, 128>}, {transform_indices = @transform_5, window_bounds = array<i64: 8, 8, 128>}, {pipeline_mode = #tpu.pipeline_mode<synchronous>, transform_indices = @transform_6, window_bounds = array<i64: 8, 128>}, {transform_indices = @transform_7, window_bounds = array<i64: 8, 8, 128>}]} {
    %c0_i32 = arith.constant 0 : i32
    %0 = arith.cmpi eq, %arg0, %c0_i32 : i32
    %1 = arith.extui %0 : i1 to i32
    %c0_i32_0 = arith.constant 0 : i32
    %2 = arith.cmpi ne, %1, %c0_i32_0 : i32
    scf.if %2 {
      %cst_87 = arith.constant 0.000000e+00 : f32
      %301 = vector.broadcast %cst_87 : f32 to vector<8x128xf32>
      %c0_88 = arith.constant 0 : index
      %c0_89 = arith.constant 0 : index
      %302 = vector.load %arg9[%c0_88, %c0_89] : memref<8x128xf32, #tpu.memory_space<vmem>>, vector<8x128xf32>
      tpu.vector_store %arg9[%c0_88, %c0_89], %301 {strides = array<i32>} : memref<8x128xf32, #tpu.memory_space<vmem>>, vector<8x128xf32>,
    } else {
    }
    %c0 = arith.constant 0 : index
    %c0_1 = arith.constant 0 : index
    %c0_2 = arith.constant 0 : index
    %3 = vector.load %arg1[%c0, %c0_1, %c0_2] : memref<8x8x128xbf16, #tpu.memory_space<vmem>>, vector<8x8x128xbf16>
    %4 = vector.shape_cast %3 : vector<8x8x128xbf16> to vector<64x128xbf16>
    %c0_3 = arith.constant 0 : index
    %c0_4 = arith.constant 0 : index
    %5 = vector.load %arg2[%c0_3, %c0_4] : memref<128x384xbf16, #tpu.memory_space<vmem>>, vector<128x384xbf16>
    %cst = arith.constant dense<0.000000e+00> : vector<64x384xf32>
    %6 = tpu.matmul %4, %5, %cst {dimension_numbers = #tpu.dot_dimension_numbers<[1], [0], [0], [1], [0, 0, 1, 1], [], []>} : vector<64x128xbf16>, vector<128x384xbf16>, vector<64x384xf32> -> vector<64x384xf32>
    %c0_5 = arith.constant 0 : index
    %c0_6 = arith.constant 0 : index
    %7 = vector.load %arg4[%c0_5, %c0_6] : memref<1x384xf32, #tpu.memory_space<vmem>>, vector<1x384xf32>
    %8 = vector.broadcast %7 : vector<1x384xf32> to vector<64x384xf32>
    %9 = arith.addf %6, %8 : vector<64x384xf32>
    %10 = vector.shape_cast %9 : vector<64x384xf32> to vector<8x8x384xf32>
    %c0_7 = arith.constant 0 : index
    %c0_8 = arith.constant 0 : index
    %11 = vector.load %arg9[%c0_7, %c0_8] : memref<8x128xf32, #tpu.memory_space<vmem>>, vector<8x128xf32>
    %12 = vector.extract_strided_slice %10 {offsets = [0, 0, 0], sizes = [1, 8, 384], strides = [1, 1, 1]} : vector<8x8x384xf32> to vector<1x8x384xf32>
    %13 = vector.shape_cast %12 : vector<1x8x384xf32> to vector<8x384xf32>
    %14 = arith.truncf %11 : vector<8x128xf32> to vector<8x128xbf16>
    %c0_9 = arith.constant 0 : index
    %c0_10 = arith.constant 0 : index
    %15 = vector.load %arg3[%c0_9, %c0_10] : memref<128x384xbf16, #tpu.memory_space<vmem>>, vector<128x384xbf16>
    %cst_11 = arith.constant dense<0.000000e+00> : vector<8x384xf32>
    %16 = tpu.matmul %14, %15, %cst_11 {dimension_numbers = #tpu.dot_dimension_numbers<[1], [0], [0], [1], [0, 0, 1, 1], [], []>} : vector<8x128xbf16>, vector<128x384xbf16>, vector<8x384xf32> -> vector<8x384xf32>
    %17 = vector.extract_strided_slice %13 {offsets = [0, 0], sizes = [8, 128], strides = [1, 1]} : vector<8x384xf32> to vector<8x128xf32>
    %18 = vector.extract_strided_slice %16 {offsets = [0, 0], sizes = [8, 128], strides = [1, 1]} : vector<8x384xf32> to vector<8x128xf32>
    %19 = arith.addf %17, %18 : vector<8x128xf32>
    %20 = arith.negf %19 : vector<8x128xf32>
    %21 = math.exp %20 : vector<8x128xf32>
    %cst_12 = arith.constant 1.000000e+00 : f32
    %22 = vector.broadcast %cst_12 : f32 to vector<8x128xf32>
    %23 = arith.addf %22, %21 : vector<8x128xf32>
    %24 = arith.divf %22, %23 : vector<8x128xf32>
    %25 = vector.extract_strided_slice %13 {offsets = [0, 128], sizes = [8, 128], strides = [1, 1]} : vector<8x384xf32> to vector<8x128xf32>
    %26 = vector.extract_strided_slice %16 {offsets = [0, 128], sizes = [8, 128], strides = [1, 1]} : vector<8x384xf32> to vector<8x128xf32>
    %27 = arith.addf %25, %26 : vector<8x128xf32>
    %28 = arith.negf %27 : vector<8x128xf32>
    %29 = math.exp %28 : vector<8x128xf32>
    %cst_13 = arith.constant 1.000000e+00 : f32
    %30 = vector.broadcast %cst_13 : f32 to vector<8x128xf32>
    %31 = arith.addf %30, %29 : vector<8x128xf32>
    %32 = arith.divf %30, %31 : vector<8x128xf32>
    %33 = vector.extract_strided_slice %13 {offsets = [0, 256], sizes = [8, 128], strides = [1, 1]} : vector<8x384xf32> to vector<8x128xf32>
    %34 = vector.extract_strided_slice %16 {offsets = [0, 256], sizes = [8, 128], strides = [1, 1]} : vector<8x384xf32> to vector<8x128xf32>
    %35 = arith.mulf %32, %34 : vector<8x128xf32>
    %36 = arith.addf %33, %35 : vector<8x128xf32>
    %37 = math.tanh %36 : vector<8x128xf32>
    %cst_14 = arith.constant 1.000000e+00 : f32
    %38 = vector.broadcast %cst_14 : f32 to vector<8x128xf32>
    %39 = arith.subf %38, %24 : vector<8x128xf32>
    %40 = arith.mulf %39, %37 : vector<8x128xf32>
    %41 = arith.mulf %24, %11 : vector<8x128xf32>
    %42 = arith.addf %40, %41 : vector<8x128xf32>
    %43 = arith.truncf %42 : vector<8x128xf32> to vector<8x128xbf16>
    %c0_15 = arith.constant 0 : index
    %c0_16 = arith.constant 0 : index
    %c0_17 = arith.constant 0 : index
    %44 = vector.load %arg6[%c0_15, %c0_16, %c0_17] : memref<8x8x128xbf16, #tpu.memory_space<vmem>>, vector<1x8x128xbf16>
    %45 = vector.shape_cast %44 : vector<1x8x128xbf16> to vector<8x128xbf16>
    %46 = vector.shape_cast %43 : vector<8x128xbf16> to vector<1x8x128xbf16>
    tpu.vector_store %arg6[%c0_15, %c0_16, %c0_17], %46 {strides = array<i32>} : memref<8x8x128xbf16, #tpu.memory_space<vmem>>, vector<1x8x128xbf16>,
    %47 = vector.extract_strided_slice %10 {offsets = [1, 0, 0], sizes = [1, 8, 384], strides = [1, 1, 1]} : vector<8x8x384xf32> to vector<1x8x384xf32>
    %48 = vector.shape_cast %47 : vector<1x8x384xf32> to vector<8x384xf32>
    %49 = arith.truncf %42 : vector<8x128xf32> to vector<8x128xbf16>
    %c0_18 = arith.constant 0 : index
    %c0_19 = arith.constant 0 : index
    %50 = vector.load %arg3[%c0_18, %c0_19] : memref<128x384xbf16, #tpu.memory_space<vmem>>, vector<128x384xbf16>
    %cst_20 = arith.constant dense<0.000000e+00> : vector<8x384xf32>
    %51 = tpu.matmul %49, %50, %cst_20 {dimension_numbers = #tpu.dot_dimension_numbers<[1], [0], [0], [1], [0, 0, 1, 1], [], []>} : vector<8x128xbf16>, vector<128x384xbf16>, vector<8x384xf32> -> vector<8x384xf32>
    %52 = vector.extract_strided_slice %48 {offsets = [0, 0], sizes = [8, 128], strides = [1, 1]} : vector<8x384xf32> to vector<8x128xf32>
    %53 = vector.extract_strided_slice %51 {offsets = [0, 0], sizes = [8, 128], strides = [1, 1]} : vector<8x384xf32> to vector<8x128xf32>
    %54 = arith.addf %52, %53 : vector<8x128xf32>
    %55 = arith.negf %54 : vector<8x128xf32>
    %56 = math.exp %55 : vector<8x128xf32>
    %cst_21 = arith.constant 1.000000e+00 : f32
    %57 = vector.broadcast %cst_21 : f32 to vector<8x128xf32>
    %58 = arith.addf %57, %56 : vector<8x128xf32>
    %59 = arith.divf %57, %58 : vector<8x128xf32>
    %60 = vector.extract_strided_slice %48 {offsets = [0, 128], sizes = [8, 128], strides = [1, 1]} : vector<8x384xf32> to vector<8x128xf32>
    %61 = vector.extract_strided_slice %51 {offsets = [0, 128], sizes = [8, 128], strides = [1, 1]} : vector<8x384xf32> to vector<8x128xf32>
    %62 = arith.addf %60, %61 : vector<8x128xf32>
    %63 = arith.negf %62 : vector<8x128xf32>
    %64 = math.exp %63 : vector<8x128xf32>
    %cst_22 = arith.constant 1.000000e+00 : f32
    %65 = vector.broadcast %cst_22 : f32 to vector<8x128xf32>
    %66 = arith.addf %65, %64 : vector<8x128xf32>
    %67 = arith.divf %65, %66 : vector<8x128xf32>
    %68 = vector.extract_strided_slice %48 {offsets = [0, 256], sizes = [8, 128], strides = [1, 1]} : vector<8x384xf32> to vector<8x128xf32>
    %69 = vector.extract_strided_slice %51 {offsets = [0, 256], sizes = [8, 128], strides = [1, 1]} : vector<8x384xf32> to vector<8x128xf32>
    %70 = arith.mulf %67, %69 : vector<8x128xf32>
    %71 = arith.addf %68, %70 : vector<8x128xf32>
    %72 = math.tanh %71 : vector<8x128xf32>
    %cst_23 = arith.constant 1.000000e+00 : f32
    %73 = vector.broadcast %cst_23 : f32 to vector<8x128xf32>
    %74 = arith.subf %73, %59 : vector<8x128xf32>
    %75 = arith.mulf %74, %72 : vector<8x128xf32>
    %76 = arith.mulf %59, %42 : vector<8x128xf32>
    %77 = arith.addf %75, %76 : vector<8x128xf32>
    %78 = arith.truncf %77 : vector<8x128xf32> to vector<8x128xbf16>
    %c1 = arith.constant 1 : index
    %c0_24 = arith.constant 0 : index
    %c0_25 = arith.constant 0 : index
    %79 = vector.load %arg6[%c1, %c0_24, %c0_25] : memref<8x8x128xbf16, #tpu.memory_space<vmem>>, vector<1x8x128xbf16>
    %80 = vector.shape_cast %79 : vector<1x8x128xbf16> to vector<8x128xbf16>
    %81 = vector.shape_cast %78 : vector<8x128xbf16> to vector<1x8x128xbf16>
    tpu.vector_store %arg6[%c1, %c0_24, %c0_25], %81 {strides = array<i32>} : memref<8x8x128xbf16, #tpu.memory_space<vmem>>, vector<1x8x128xbf16>,
    %82 = vector.extract_strided_slice %10 {offsets = [2, 0, 0], sizes = [1, 8, 384], strides = [1, 1, 1]} : vector<8x8x384xf32> to vector<1x8x384xf32>
    %83 = vector.shape_cast %82 : vector<1x8x384xf32> to vector<8x384xf32>
    %84 = arith.truncf %77 : vector<8x128xf32> to vector<8x128xbf16>
    %c0_26 = arith.constant 0 : index
    %c0_27 = arith.constant 0 : index
    %85 = vector.load %arg3[%c0_26, %c0_27] : memref<128x384xbf16, #tpu.memory_space<vmem>>, vector<128x384xbf16>
    %cst_28 = arith.constant dense<0.000000e+00> : vector<8x384xf32>
    %86 = tpu.matmul %84, %85, %cst_28 {dimension_numbers = #tpu.dot_dimension_numbers<[1], [0], [0], [1], [0, 0, 1, 1], [], []>} : vector<8x128xbf16>, vector<128x384xbf16>, vector<8x384xf32> -> vector<8x384xf32>
    %87 = vector.extract_strided_slice %83 {offsets = [0, 0], sizes = [8, 128], strides = [1, 1]} : vector<8x384xf32> to vector<8x128xf32>
    %88 = vector.extract_strided_slice %86 {offsets = [0, 0], sizes = [8, 128], strides = [1, 1]} : vector<8x384xf32> to vector<8x128xf32>
    %89 = arith.addf %87, %88 : vector<8x128xf32>
    %90 = arith.negf %89 : vector<8x128xf32>
    %91 = math.exp %90 : vector<8x128xf32>
    %cst_29 = arith.constant 1.000000e+00 : f32
    %92 = vector.broadcast %cst_29 : f32 to vector<8x128xf32>
    %93 = arith.addf %92, %91 : vector<8x128xf32>
    %94 = arith.divf %92, %93 : vector<8x128xf32>
    %95 = vector.extract_strided_slice %83 {offsets = [0, 128], sizes = [8, 128], strides = [1, 1]} : vector<8x384xf32> to vector<8x128xf32>
    %96 = vector.extract_strided_slice %86 {offsets = [0, 128], sizes = [8, 128], strides = [1, 1]} : vector<8x384xf32> to vector<8x128xf32>
    %97 = arith.addf %95, %96 : vector<8x128xf32>
    %98 = arith.negf %97 : vector<8x128xf32>
    %99 = math.exp %98 : vector<8x128xf32>
    %cst_30 = arith.constant 1.000000e+00 : f32
    %100 = vector.broadcast %cst_30 : f32 to vector<8x128xf32>
    %101 = arith.addf %100, %99 : vector<8x128xf32>
    %102 = arith.divf %100, %101 : vector<8x128xf32>
    %103 = vector.extract_strided_slice %83 {offsets = [0, 256], sizes = [8, 128], strides = [1, 1]} : vector<8x384xf32> to vector<8x128xf32>
    %104 = vector.extract_strided_slice %86 {offsets = [0, 256], sizes = [8, 128], strides = [1, 1]} : vector<8x384xf32> to vector<8x128xf32>
    %105 = arith.mulf %102, %104 : vector<8x128xf32>
    %106 = arith.addf %103, %105 : vector<8x128xf32>
    %107 = math.tanh %106 : vector<8x128xf32>
    %cst_31 = arith.constant 1.000000e+00 : f32
    %108 = vector.broadcast %cst_31 : f32 to vector<8x128xf32>
    %109 = arith.subf %108, %94 : vector<8x128xf32>
    %110 = arith.mulf %109, %107 : vector<8x128xf32>
    %111 = arith.mulf %94, %77 : vector<8x128xf32>
    %112 = arith.addf %110, %111 : vector<8x128xf32>
    %113 = arith.truncf %112 : vector<8x128xf32> to vector<8x128xbf16>
    %c2 = arith.constant 2 : index
    %c0_32 = arith.constant 0 : index
    %c0_33 = arith.constant 0 : index
    %114 = vector.load %arg6[%c2, %c0_32, %c0_33] : memref<8x8x128xbf16, #tpu.memory_space<vmem>>, vector<1x8x128xbf16>
    %115 = vector.shape_cast %114 : vector<1x8x128xbf16> to vector<8x128xbf16>
    %116 = vector.shape_cast %113 : vector<8x128xbf16> to vector<1x8x128xbf16>
    tpu.vector_store %arg6[%c2, %c0_32, %c0_33], %116 {strides = array<i32>} : memref<8x8x128xbf16, #tpu.memory_space<vmem>>, vector<1x8x128xbf16>,
    %117 = vector.extract_strided_slice %10 {offsets = [3, 0, 0], sizes = [1, 8, 384], strides = [1, 1, 1]} : vector<8x8x384xf32> to vector<1x8x384xf32>
    %118 = vector.shape_cast %117 : vector<1x8x384xf32> to vector<8x384xf32>
    %119 = arith.truncf %112 : vector<8x128xf32> to vector<8x128xbf16>
    %c0_34 = arith.constant 0 : index
    %c0_35 = arith.constant 0 : index
    %120 = vector.load %arg3[%c0_34, %c0_35] : memref<128x384xbf16, #tpu.memory_space<vmem>>, vector<128x384xbf16>
    %cst_36 = arith.constant dense<0.000000e+00> : vector<8x384xf32>
    %121 = tpu.matmul %119, %120, %cst_36 {dimension_numbers = #tpu.dot_dimension_numbers<[1], [0], [0], [1], [0, 0, 1, 1], [], []>} : vector<8x128xbf16>, vector<128x384xbf16>, vector<8x384xf32> -> vector<8x384xf32>
    %122 = vector.extract_strided_slice %118 {offsets = [0, 0], sizes = [8, 128], strides = [1, 1]} : vector<8x384xf32> to vector<8x128xf32>
    %123 = vector.extract_strided_slice %121 {offsets = [0, 0], sizes = [8, 128], strides = [1, 1]} : vector<8x384xf32> to vector<8x128xf32>
    %124 = arith.addf %122, %123 : vector<8x128xf32>
    %125 = arith.negf %124 : vector<8x128xf32>
    %126 = math.exp %125 : vector<8x128xf32>
    %cst_37 = arith.constant 1.000000e+00 : f32
    %127 = vector.broadcast %cst_37 : f32 to vector<8x128xf32>
    %128 = arith.addf %127, %126 : vector<8x128xf32>
    %129 = arith.divf %127, %128 : vector<8x128xf32>
    %130 = vector.extract_strided_slice %118 {offsets = [0, 128], sizes = [8, 128], strides = [1, 1]} : vector<8x384xf32> to vector<8x128xf32>
    %131 = vector.extract_strided_slice %121 {offsets = [0, 128], sizes = [8, 128], strides = [1, 1]} : vector<8x384xf32> to vector<8x128xf32>
    %132 = arith.addf %130, %131 : vector<8x128xf32>
    %133 = arith.negf %132 : vector<8x128xf32>
    %134 = math.exp %133 : vector<8x128xf32>
    %cst_38 = arith.constant 1.000000e+00 : f32
    %135 = vector.broadcast %cst_38 : f32 to vector<8x128xf32>
    %136 = arith.addf %135, %134 : vector<8x128xf32>
    %137 = arith.divf %135, %136 : vector<8x128xf32>
    %138 = vector.extract_strided_slice %118 {offsets = [0, 256], sizes = [8, 128], strides = [1, 1]} : vector<8x384xf32> to vector<8x128xf32>
    %139 = vector.extract_strided_slice %121 {offsets = [0, 256], sizes = [8, 128], strides = [1, 1]} : vector<8x384xf32> to vector<8x128xf32>
    %140 = arith.mulf %137, %139 : vector<8x128xf32>
    %141 = arith.addf %138, %140 : vector<8x128xf32>
    %142 = math.tanh %141 : vector<8x128xf32>
    %cst_39 = arith.constant 1.000000e+00 : f32
    %143 = vector.broadcast %cst_39 : f32 to vector<8x128xf32>
    %144 = arith.subf %143, %129 : vector<8x128xf32>
    %145 = arith.mulf %144, %142 : vector<8x128xf32>
    %146 = arith.mulf %129, %112 : vector<8x128xf32>
    %147 = arith.addf %145, %146 : vector<8x128xf32>
    %148 = arith.truncf %147 : vector<8x128xf32> to vector<8x128xbf16>
    %c3 = arith.constant 3 : index
    %c0_40 = arith.constant 0 : index
    %c0_41 = arith.constant 0 : index
    %149 = vector.load %arg6[%c3, %c0_40, %c0_41] : memref<8x8x128xbf16, #tpu.memory_space<vmem>>, vector<1x8x128xbf16>
    %150 = vector.shape_cast %149 : vector<1x8x128xbf16> to vector<8x128xbf16>
    %151 = vector.shape_cast %148 : vector<8x128xbf16> to vector<1x8x128xbf16>
    tpu.vector_store %arg6[%c3, %c0_40, %c0_41], %151 {strides = array<i32>} : memref<8x8x128xbf16, #tpu.memory_space<vmem>>, vector<1x8x128xbf16>,
    %152 = vector.extract_strided_slice %10 {offsets = [4, 0, 0], sizes = [1, 8, 384], strides = [1, 1, 1]} : vector<8x8x384xf32> to vector<1x8x384xf32>
    %153 = vector.shape_cast %152 : vector<1x8x384xf32> to vector<8x384xf32>
    %154 = arith.truncf %147 : vector<8x128xf32> to vector<8x128xbf16>
    %c0_42 = arith.constant 0 : index
    %c0_43 = arith.constant 0 : index
    %155 = vector.load %arg3[%c0_42, %c0_43] : memref<128x384xbf16, #tpu.memory_space<vmem>>, vector<128x384xbf16>
    %cst_44 = arith.constant dense<0.000000e+00> : vector<8x384xf32>
    %156 = tpu.matmul %154, %155, %cst_44 {dimension_numbers = #tpu.dot_dimension_numbers<[1], [0], [0], [1], [0, 0, 1, 1], [], []>} : vector<8x128xbf16>, vector<128x384xbf16>, vector<8x384xf32> -> vector<8x384xf32>
    %157 = vector.extract_strided_slice %153 {offsets = [0, 0], sizes = [8, 128], strides = [1, 1]} : vector<8x384xf32> to vector<8x128xf32>
    %158 = vector.extract_strided_slice %156 {offsets = [0, 0], sizes = [8, 128], strides = [1, 1]} : vector<8x384xf32> to vector<8x128xf32>
    %159 = arith.addf %157, %158 : vector<8x128xf32>
    %160 = arith.negf %159 : vector<8x128xf32>
    %161 = math.exp %160 : vector<8x128xf32>
    %cst_45 = arith.constant 1.000000e+00 : f32
    %162 = vector.broadcast %cst_45 : f32 to vector<8x128xf32>
    %163 = arith.addf %162, %161 : vector<8x128xf32>
    %164 = arith.divf %162, %163 : vector<8x128xf32>
    %165 = vector.extract_strided_slice %153 {offsets = [0, 128], sizes = [8, 128], strides = [1, 1]} : vector<8x384xf32> to vector<8x128xf32>
    %166 = vector.extract_strided_slice %156 {offsets = [0, 128], sizes = [8, 128], strides = [1, 1]} : vector<8x384xf32> to vector<8x128xf32>
    %167 = arith.addf %165, %166 : vector<8x128xf32>
    %168 = arith.negf %167 : vector<8x128xf32>
    %169 = math.exp %168 : vector<8x128xf32>
    %cst_46 = arith.constant 1.000000e+00 : f32
    %170 = vector.broadcast %cst_46 : f32 to vector<8x128xf32>
    %171 = arith.addf %170, %169 : vector<8x128xf32>
    %172 = arith.divf %170, %171 : vector<8x128xf32>
    %173 = vector.extract_strided_slice %153 {offsets = [0, 256], sizes = [8, 128], strides = [1, 1]} : vector<8x384xf32> to vector<8x128xf32>
    %174 = vector.extract_strided_slice %156 {offsets = [0, 256], sizes = [8, 128], strides = [1, 1]} : vector<8x384xf32> to vector<8x128xf32>
    %175 = arith.mulf %172, %174 : vector<8x128xf32>
    %176 = arith.addf %173, %175 : vector<8x128xf32>
    %177 = math.tanh %176 : vector<8x128xf32>
    %cst_47 = arith.constant 1.000000e+00 : f32
    %178 = vector.broadcast %cst_47 : f32 to vector<8x128xf32>
    %179 = arith.subf %178, %164 : vector<8x128xf32>
    %180 = arith.mulf %179, %177 : vector<8x128xf32>
    %181 = arith.mulf %164, %147 : vector<8x128xf32>
    %182 = arith.addf %180, %181 : vector<8x128xf32>
    %183 = arith.truncf %182 : vector<8x128xf32> to vector<8x128xbf16>
    %c4 = arith.constant 4 : index
    %c0_48 = arith.constant 0 : index
    %c0_49 = arith.constant 0 : index
    %184 = vector.load %arg6[%c4, %c0_48, %c0_49] : memref<8x8x128xbf16, #tpu.memory_space<vmem>>, vector<1x8x128xbf16>
    %185 = vector.shape_cast %184 : vector<1x8x128xbf16> to vector<8x128xbf16>
    %186 = vector.shape_cast %183 : vector<8x128xbf16> to vector<1x8x128xbf16>
    tpu.vector_store %arg6[%c4, %c0_48, %c0_49], %186 {strides = array<i32>} : memref<8x8x128xbf16, #tpu.memory_space<vmem>>, vector<1x8x128xbf16>,
    %187 = vector.extract_strided_slice %10 {offsets = [5, 0, 0], sizes = [1, 8, 384], strides = [1, 1, 1]} : vector<8x8x384xf32> to vector<1x8x384xf32>
    %188 = vector.shape_cast %187 : vector<1x8x384xf32> to vector<8x384xf32>
    %189 = arith.truncf %182 : vector<8x128xf32> to vector<8x128xbf16>
    %c0_50 = arith.constant 0 : index
    %c0_51 = arith.constant 0 : index
    %190 = vector.load %arg3[%c0_50, %c0_51] : memref<128x384xbf16, #tpu.memory_space<vmem>>, vector<128x384xbf16>
    %cst_52 = arith.constant dense<0.000000e+00> : vector<8x384xf32>
    %191 = tpu.matmul %189, %190, %cst_52 {dimension_numbers = #tpu.dot_dimension_numbers<[1], [0], [0], [1], [0, 0, 1, 1], [], []>} : vector<8x128xbf16>, vector<128x384xbf16>, vector<8x384xf32> -> vector<8x384xf32>
    %192 = vector.extract_strided_slice %188 {offsets = [0, 0], sizes = [8, 128], strides = [1, 1]} : vector<8x384xf32> to vector<8x128xf32>
    %193 = vector.extract_strided_slice %191 {offsets = [0, 0], sizes = [8, 128], strides = [1, 1]} : vector<8x384xf32> to vector<8x128xf32>
    %194 = arith.addf %192, %193 : vector<8x128xf32>
    %195 = arith.negf %194 : vector<8x128xf32>
    %196 = math.exp %195 : vector<8x128xf32>
    %cst_53 = arith.constant 1.000000e+00 : f32
    %197 = vector.broadcast %cst_53 : f32 to vector<8x128xf32>
    %198 = arith.addf %197, %196 : vector<8x128xf32>
    %199 = arith.divf %197, %198 : vector<8x128xf32>
    %200 = vector.extract_strided_slice %188 {offsets = [0, 128], sizes = [8, 128], strides = [1, 1]} : vector<8x384xf32> to vector<8x128xf32>
    %201 = vector.extract_strided_slice %191 {offsets = [0, 128], sizes = [8, 128], strides = [1, 1]} : vector<8x384xf32> to vector<8x128xf32>
    %202 = arith.addf %200, %201 : vector<8x128xf32>
    %203 = arith.negf %202 : vector<8x128xf32>
    %204 = math.exp %203 : vector<8x128xf32>
    %cst_54 = arith.constant 1.000000e+00 : f32
    %205 = vector.broadcast %cst_54 : f32 to vector<8x128xf32>
    %206 = arith.addf %205, %204 : vector<8x128xf32>
    %207 = arith.divf %205, %206 : vector<8x128xf32>
    %208 = vector.extract_strided_slice %188 {offsets = [0, 256], sizes = [8, 128], strides = [1, 1]} : vector<8x384xf32> to vector<8x128xf32>
    %209 = vector.extract_strided_slice %191 {offsets = [0, 256], sizes = [8, 128], strides = [1, 1]} : vector<8x384xf32> to vector<8x128xf32>
    %210 = arith.mulf %207, %209 : vector<8x128xf32>
    %211 = arith.addf %208, %210 : vector<8x128xf32>
    %212 = math.tanh %211 : vector<8x128xf32>
    %cst_55 = arith.constant 1.000000e+00 : f32
    %213 = vector.broadcast %cst_55 : f32 to vector<8x128xf32>
    %214 = arith.subf %213, %199 : vector<8x128xf32>
    %215 = arith.mulf %214, %212 : vector<8x128xf32>
    %216 = arith.mulf %199, %182 : vector<8x128xf32>
    %217 = arith.addf %215, %216 : vector<8x128xf32>
    %218 = arith.truncf %217 : vector<8x128xf32> to vector<8x128xbf16>
    %c5 = arith.constant 5 : index
    %c0_56 = arith.constant 0 : index
    %c0_57 = arith.constant 0 : index
    %219 = vector.load %arg6[%c5, %c0_56, %c0_57] : memref<8x8x128xbf16, #tpu.memory_space<vmem>>, vector<1x8x128xbf16>
    %220 = vector.shape_cast %219 : vector<1x8x128xbf16> to vector<8x128xbf16>
    %221 = vector.shape_cast %218 : vector<8x128xbf16> to vector<1x8x128xbf16>
    tpu.vector_store %arg6[%c5, %c0_56, %c0_57], %221 {strides = array<i32>} : memref<8x8x128xbf16, #tpu.memory_space<vmem>>, vector<1x8x128xbf16>,
    %222 = vector.extract_strided_slice %10 {offsets = [6, 0, 0], sizes = [1, 8, 384], strides = [1, 1, 1]} : vector<8x8x384xf32> to vector<1x8x384xf32>
    %223 = vector.shape_cast %222 : vector<1x8x384xf32> to vector<8x384xf32>
    %224 = arith.truncf %217 : vector<8x128xf32> to vector<8x128xbf16>
    %c0_58 = arith.constant 0 : index
    %c0_59 = arith.constant 0 : index
    %225 = vector.load %arg3[%c0_58, %c0_59] : memref<128x384xbf16, #tpu.memory_space<vmem>>, vector<128x384xbf16>
    %cst_60 = arith.constant dense<0.000000e+00> : vector<8x384xf32>
    %226 = tpu.matmul %224, %225, %cst_60 {dimension_numbers = #tpu.dot_dimension_numbers<[1], [0], [0], [1], [0, 0, 1, 1], [], []>} : vector<8x128xbf16>, vector<128x384xbf16>, vector<8x384xf32> -> vector<8x384xf32>
    %227 = vector.extract_strided_slice %223 {offsets = [0, 0], sizes = [8, 128], strides = [1, 1]} : vector<8x384xf32> to vector<8x128xf32>
    %228 = vector.extract_strided_slice %226 {offsets = [0, 0], sizes = [8, 128], strides = [1, 1]} : vector<8x384xf32> to vector<8x128xf32>
    %229 = arith.addf %227, %228 : vector<8x128xf32>
    %230 = arith.negf %229 : vector<8x128xf32>
    %231 = math.exp %230 : vector<8x128xf32>
    %cst_61 = arith.constant 1.000000e+00 : f32
    %232 = vector.broadcast %cst_61 : f32 to vector<8x128xf32>
    %233 = arith.addf %232, %231 : vector<8x128xf32>
    %234 = arith.divf %232, %233 : vector<8x128xf32>
    %235 = vector.extract_strided_slice %223 {offsets = [0, 128], sizes = [8, 128], strides = [1, 1]} : vector<8x384xf32> to vector<8x128xf32>
    %236 = vector.extract_strided_slice %226 {offsets = [0, 128], sizes = [8, 128], strides = [1, 1]} : vector<8x384xf32> to vector<8x128xf32>
    %237 = arith.addf %235, %236 : vector<8x128xf32>
    %238 = arith.negf %237 : vector<8x128xf32>
    %239 = math.exp %238 : vector<8x128xf32>
    %cst_62 = arith.constant 1.000000e+00 : f32
    %240 = vector.broadcast %cst_62 : f32 to vector<8x128xf32>
    %241 = arith.addf %240, %239 : vector<8x128xf32>
    %242 = arith.divf %240, %241 : vector<8x128xf32>
    %243 = vector.extract_strided_slice %223 {offsets = [0, 256], sizes = [8, 128], strides = [1, 1]} : vector<8x384xf32> to vector<8x128xf32>
    %244 = vector.extract_strided_slice %226 {offsets = [0, 256], sizes = [8, 128], strides = [1, 1]} : vector<8x384xf32> to vector<8x128xf32>
    %245 = arith.mulf %242, %244 : vector<8x128xf32>
    %246 = arith.addf %243, %245 : vector<8x128xf32>
    %247 = math.tanh %246 : vector<8x128xf32>
    %cst_63 = arith.constant 1.000000e+00 : f32
    %248 = vector.broadcast %cst_63 : f32 to vector<8x128xf32>
    %249 = arith.subf %248, %234 : vector<8x128xf32>
    %250 = arith.mulf %249, %247 : vector<8x128xf32>
    %251 = arith.mulf %234, %217 : vector<8x128xf32>
    %252 = arith.addf %250, %251 : vector<8x128xf32>
    %253 = arith.truncf %252 : vector<8x128xf32> to vector<8x128xbf16>
    %c6 = arith.constant 6 : index
    %c0_64 = arith.constant 0 : index
    %c0_65 = arith.constant 0 : index
    %254 = vector.load %arg6[%c6, %c0_64, %c0_65] : memref<8x8x128xbf16, #tpu.memory_space<vmem>>, vector<1x8x128xbf16>
    %255 = vector.shape_cast %254 : vector<1x8x128xbf16> to vector<8x128xbf16>
    %256 = vector.shape_cast %253 : vector<8x128xbf16> to vector<1x8x128xbf16>
    tpu.vector_store %arg6[%c6, %c0_64, %c0_65], %256 {strides = array<i32>} : memref<8x8x128xbf16, #tpu.memory_space<vmem>>, vector<1x8x128xbf16>,
    %257 = vector.extract_strided_slice %10 {offsets = [7, 0, 0], sizes = [1, 8, 384], strides = [1, 1, 1]} : vector<8x8x384xf32> to vector<1x8x384xf32>
    %258 = vector.shape_cast %257 : vector<1x8x384xf32> to vector<8x384xf32>
    %259 = arith.truncf %252 : vector<8x128xf32> to vector<8x128xbf16>
    %c0_66 = arith.constant 0 : index
    %c0_67 = arith.constant 0 : index
    %260 = vector.load %arg3[%c0_66, %c0_67] : memref<128x384xbf16, #tpu.memory_space<vmem>>, vector<128x384xbf16>
    %cst_68 = arith.constant dense<0.000000e+00> : vector<8x384xf32>
    %261 = tpu.matmul %259, %260, %cst_68 {dimension_numbers = #tpu.dot_dimension_numbers<[1], [0], [0], [1], [0, 0, 1, 1], [], []>} : vector<8x128xbf16>, vector<128x384xbf16>, vector<8x384xf32> -> vector<8x384xf32>
    %262 = vector.extract_strided_slice %258 {offsets = [0, 0], sizes = [8, 128], strides = [1, 1]} : vector<8x384xf32> to vector<8x128xf32>
    %263 = vector.extract_strided_slice %261 {offsets = [0, 0], sizes = [8, 128], strides = [1, 1]} : vector<8x384xf32> to vector<8x128xf32>
    %264 = arith.addf %262, %263 : vector<8x128xf32>
    %265 = arith.negf %264 : vector<8x128xf32>
    %266 = math.exp %265 : vector<8x128xf32>
    %cst_69 = arith.constant 1.000000e+00 : f32
    %267 = vector.broadcast %cst_69 : f32 to vector<8x128xf32>
    %268 = arith.addf %267, %266 : vector<8x128xf32>
    %269 = arith.divf %267, %268 : vector<8x128xf32>
    %270 = vector.extract_strided_slice %258 {offsets = [0, 128], sizes = [8, 128], strides = [1, 1]} : vector<8x384xf32> to vector<8x128xf32>
    %271 = vector.extract_strided_slice %261 {offsets = [0, 128], sizes = [8, 128], strides = [1, 1]} : vector<8x384xf32> to vector<8x128xf32>
    %272 = arith.addf %270, %271 : vector<8x128xf32>
    %273 = arith.negf %272 : vector<8x128xf32>
    %274 = math.exp %273 : vector<8x128xf32>
    %cst_70 = arith.constant 1.000000e+00 : f32
    %275 = vector.broadcast %cst_70 : f32 to vector<8x128xf32>
    %276 = arith.addf %275, %274 : vector<8x128xf32>
    %277 = arith.divf %275, %276 : vector<8x128xf32>
    %278 = vector.extract_strided_slice %258 {offsets = [0, 256], sizes = [8, 128], strides = [1, 1]} : vector<8x384xf32> to vector<8x128xf32>
    %279 = vector.extract_strided_slice %261 {offsets = [0, 256], sizes = [8, 128], strides = [1, 1]} : vector<8x384xf32> to vector<8x128xf32>
    %280 = arith.mulf %277, %279 : vector<8x128xf32>
    %281 = arith.addf %278, %280 : vector<8x128xf32>
    %282 = math.tanh %281 : vector<8x128xf32>
    %cst_71 = arith.constant 1.000000e+00 : f32
    %283 = vector.broadcast %cst_71 : f32 to vector<8x128xf32>
    %284 = arith.subf %283, %269 : vector<8x128xf32>
    %285 = arith.mulf %284, %282 : vector<8x128xf32>
    %286 = arith.mulf %269, %252 : vector<8x128xf32>
    %287 = arith.addf %285, %286 : vector<8x128xf32>
    %288 = arith.truncf %287 : vector<8x128xf32> to vector<8x128xbf16>
    %c7 = arith.constant 7 : index
    %c0_72 = arith.constant 0 : index
    %c0_73 = arith.constant 0 : index
    %289 = vector.load %arg6[%c7, %c0_72, %c0_73] : memref<8x8x128xbf16, #tpu.memory_space<vmem>>, vector<1x8x128xbf16>
    %290 = vector.shape_cast %289 : vector<1x8x128xbf16> to vector<8x128xbf16>
    %291 = vector.shape_cast %288 : vector<8x128xbf16> to vector<1x8x128xbf16>
    tpu.vector_store %arg6[%c7, %c0_72, %c0_73], %291 {strides = array<i32>} : memref<8x8x128xbf16, #tpu.memory_space<vmem>>, vector<1x8x128xbf16>,
    %c0_74 = arith.constant 0 : index
    %c0_75 = arith.constant 0 : index
    %292 = vector.load %arg9[%c0_74, %c0_75] : memref<8x128xf32, #tpu.memory_space<vmem>>, vector<8x128xf32>
    tpu.vector_store %arg9[%c0_74, %c0_75], %287 {strides = array<i32>} : memref<8x128xf32, #tpu.memory_space<vmem>>, vector<8x128xf32>,
    %c0_76 = arith.constant 0 : index
    %c0_77 = arith.constant 0 : index
    %293 = vector.load %arg7[%c0_76, %c0_77] : memref<8x128xf32, #tpu.memory_space<vmem>>, vector<8x128xf32>
    tpu.vector_store %arg7[%c0_76, %c0_77], %287 {strides = array<i32>} : memref<8x128xf32, #tpu.memory_space<vmem>>, vector<8x128xf32>,
    %c0_78 = arith.constant 0 : index
    %c0_79 = arith.constant 0 : index
    %c0_80 = arith.constant 0 : index
    %294 = vector.load %arg6[%c0_78, %c0_79, %c0_80] : memref<8x8x128xbf16, #tpu.memory_space<vmem>>, vector<8x8x128xbf16>
    %295 = vector.shape_cast %294 : vector<8x8x128xbf16> to vector<64x128xbf16>
    %c0_81 = arith.constant 0 : index
    %c0_82 = arith.constant 0 : index
    %296 = vector.load %arg5[%c0_81, %c0_82] : memref<128x128xbf16, #tpu.memory_space<vmem>>, vector<128x128xbf16>
    %cst_83 = arith.constant dense<0.000000e+00> : vector<64x128xf32>
    %297 = tpu.matmul %295, %296, %cst_83 {dimension_numbers = #tpu.dot_dimension_numbers<[1], [0], [0], [1], [0, 0, 1, 1], [], []>} : vector<64x128xbf16>, vector<128x128xbf16>, vector<64x128xf32> -> vector<64x128xf32>
    %298 = vector.shape_cast %297 : vector<64x128xf32> to vector<8x8x128xf32>
    %299 = arith.truncf %298 : vector<8x8x128xf32> to vector<8x8x128xbf16>
    %c0_84 = arith.constant 0 : index
    %c0_85 = arith.constant 0 : index
    %c0_86 = arith.constant 0 : index
    %300 = vector.load %arg8[%c0_84, %c0_85, %c0_86] : memref<8x8x128xbf16, #tpu.memory_space<vmem>>, vector<8x8x128xbf16>
    tpu.vector_store %arg8[%c0_84, %c0_85, %c0_86], %299 {strides = array<i32>} : memref<8x8x128xbf16, #tpu.memory_space<vmem>>, vector<8x8x128xbf16>,
    return
  }
  func.func @transform_0(%arg0: i32) -> (i32, i32, i32) {
    %c0_i32 = arith.constant 0 : i32
    %c0_i32_0 = arith.constant 0 : i32
    %c0_i32_1 = arith.constant 0 : i32
    return %arg0, %c0_i32, %c0_i32_0 : i32, i32, i32
  }
  func.func @transform_1(%arg0: i32) -> (i32, i32) {
    %c0_i32 = arith.constant 0 : i32
    %c0_i32_0 = arith.constant 0 : i32
    %c0_i32_1 = arith.constant 0 : i32
    return %c0_i32, %c0_i32_0 : i32, i32
  }
  func.func @transform_2(%arg0: i32) -> (i32, i32) {
    %c0_i32 = arith.constant 0 : i32
    %c0_i32_0 = arith.constant 0 : i32
    %c0_i32_1 = arith.constant 0 : i32
    return %c0_i32, %c0_i32_0 : i32, i32
  }
  func.func @transform_3(%arg0: i32) -> (i32, i32) {
    %c0_i32 = arith.constant 0 : i32
    %c0_i32_0 = arith.constant 0 : i32
    %c0_i32_1 = arith.constant 0 : i32
    return %c0_i32, %c0_i32_0 : i32, i32
  }
  func.func @transform_4(%arg0: i32) -> (i32, i32) {
    %c0_i32 = arith.constant 0 : i32
    %c0_i32_0 = arith.constant 0 : i32
    %c0_i32_1 = arith.constant 0 : i32
    return %c0_i32, %c0_i32_0 : i32, i32
  }
  func.func @transform_5(%arg0: i32) -> (i32, i32, i32) {
    %c0_i32 = arith.constant 0 : i32
    %c0_i32_0 = arith.constant 0 : i32
    %c0_i32_1 = arith.constant 0 : i32
    return %arg0, %c0_i32, %c0_i32_0 : i32, i32, i32
  }
  func.func @transform_6(%arg0: i32) -> (i32, i32) {
    %c0_i32 = arith.constant 0 : i32
    %c0_i32_0 = arith.constant 0 : i32
    %c0_i32_1 = arith.constant 0 : i32
    return %c0_i32, %c0_i32_0 : i32, i32
  }
  func.func @transform_7(%arg0: i32) -> (i32, i32, i32) {
    %c0_i32 = arith.constant 0 : i32
    %c0_i32_0 = arith.constant 0 : i32
    %c0_i32_1 = arith.constant 0 : i32
    return %arg0, %c0_i32, %c0_i32_0 : i32, i32, i32
  }
}

</mosaic_0001>

<bundles_post_ra>
// kernel: tpu_custom_call.1
= control target key start
LH: loop header
LB: loop body
LE: loop exit
PB: predicated region body
PF: predicated region fallthrough
CT: control target
= control target key end

     0   :  { %13 = vsyncpa [#allocation4], 0  ;;  %s4327_s0 = inlined_call_operand.hbm [shape: bf16[8,8,128], index: 0, kind: input, shape index: {}]   ;;  %s4328_s1 = inlined_call_operand.hbm [shape: bf16[128,384], index: 1, kind: input, shape index: {}]   ;;  %s4329_s2 = inlined_call_operand.hbm [shape: bf16[128,384], index: 2, kind: input, shape index: {}]   ;;  %s4330_s3 = inlined_call_operand.vmem [shape: f32[1,384], index: 3, kind: input, shape index: {}]   ;;  %s4331_s4 = inlined_call_operand.hbm [shape: bf16[128,128], index: 4, kind: input, shape index: {}]   ;;  %s4332_s5 = inlined_call_operand.hbm [shape: bf16[8,8,128], index: 5, kind: output, shape index: {0}]   ;;  %s4333_s6 = inlined_call_operand.hbm [shape: f32[8,128], index: 6, kind: output, shape index: {1}]   ;;  %s4334_s7 = inlined_call_operand.hbm [shape: bf16[8,8,128], index: 7, kind: output, shape index: {2}]  }
   0x1   :  { %14 = vsyncpa [#allocation7], 0 }
   0x2   :  { %15 = vsyncpa [#allocation10], 0 }
   0x3   :  { %16 = vsyncpa [#allocation5], 0 }
   0x4   :  { %17 = vsyncpa [#allocation13], 0  ;;  %s3778_s24 = smov [#allocation6]   ;;  %s3614_s28 = scalar_lea.hbm %s4328_s1, 3072 }
   0x5   :  { %s35_s25 = sshll.u32 %s3778_s24, 4  ;;  %p3615_p0 = scmp.ne.s32.totalorder %s4328_s1, %s3614_s28  ;;  %s36_s25 = int_to_ptr.vmem [resolvable:$true] %s35_s25 }
   0x6   :  { %p3618_p1 = scmp.lt.u32.totalorder %s3614_s28, %s4328_s1 }
   0x8   :  { %p3620_p2 = pnand %p3618_p1, %p3615_p0 }
   0xa   :  { %3623 = shalt.err (!%p3620_p2)
}
   0xb   :  { %s3624_s10 = scalar_lea.vmem %s36_s25, 3072  ;;  %p3629_p4 = scmp.lt.s32.totalorder %s36_s25, %s36_s25 }
   0xc   :  { %p3625_p3 = scmp.ne.s32.totalorder %s36_s25, %s3624_s10  ;;  %p3630_p5 = scmp.lt.s32.totalorder %s3624_s10, %s3624_s10 }
   0xe   :  { %p3631_p6 = por %p3630_p5, %p3629_p4 }
  0x10   :  { %p3632_p7 = pnand %p3631_p6, %p3625_p3 }
  0x12   :  { %3635 = shalt.err (!%p3632_p7)
}
  0x13   :  { %s3779_s11 = smov 192   ;;  %s3780_s12 = smov 12  }
  0x14   :  { %41 = dma.hbm_to_vmem [thread:$0]  %s4328_s1, 3072, %s36_s25, [#allocation7], %s3779_s11, %s3779_s11, %s3780_s12  }
  0x15   :  { %s3781_s15 = smov [#allocation3]   ;;  %s3636_s19 = scalar_lea.hbm %s4327_s0, 512 }
  0x16   :  { %s23_s16 = sshll.u32 %s3781_s15, 4  ;;  %p3637_p8 = scmp.ne.s32.totalorder %s4327_s0, %s3636_s19  ;;  %s24_s16 = int_to_ptr.vmem [resolvable:$true] %s23_s16 }
  0x17   :  { %p3640_p9 = scmp.lt.u32.totalorder %s3636_s19, %s4327_s0 }
  0x19   :  { %p3642_p10 = pnand %p3640_p9, %p3637_p8 }
  0x1b   :  { %3645 = shalt.err (!%p3642_p10)
}
  0x1c   :  { %s3646_s24 = scalar_lea.vmem %s24_s16, 512  ;;  %p3651_p12 = scmp.lt.s32.totalorder %s24_s16, %s24_s16 }
  0x1d   :  { %p3647_p11 = scmp.ne.s32.totalorder %s24_s16, %s3646_s24  ;;  %p3652_p13 = scmp.lt.s32.totalorder %s3646_s24, %s3646_s24 }
  0x1f   :  { %p3653_p0 = por %p3652_p13, %p3651_p12 }
  0x21   :  { %p3654_p1 = pnand %p3653_p0, %p3647_p11 }
  0x23   :  { %3657 = shalt.err (!%p3654_p1)
}
  0x24   :  { %s3782_s1 = smov 64   ;;  %s3783_s25 = smov 4  }
  0x25   :  { %29 = dma.hbm_to_vmem [thread:$0]  %s4327_s0, 512, %s24_s16, [#allocation4], %s3782_s1, %s3782_s1, %s3783_s25  }
  0x26   :  { %s3784_s28 = smov [#allocation8]   ;;  %s3785_s30 = smov [#allocation9]  }
  0x27   :  { %s47_s29 = sshll.u32 %s3784_s28, 4  ;;  %s61_s8 = sshll.u32 %s3785_s30, 4  ;;  %s48_s29 = int_to_ptr.vmem [resolvable:$true] %s47_s29  ;;  %s3863_s8 = int_to_ptr.vmem [resolvable:$true] %s61_s8 }
  0x28   :  { %s3658_s13 = scalar_lea.hbm %s4329_s2, 3072 }
  0x29   :  { %p3659_p2 = scmp.ne.s32.totalorder %s4329_s2, %s3658_s13  ;;  %p3662_p3 = scmp.lt.u32.totalorder %s3658_s13, %s4329_s2 }
  0x2b   :  { %p3664_p4 = pnand %p3662_p3, %p3659_p2 }
  0x2d   :  { %3667 = shalt.err (!%p3664_p4)
}
  0x2e   :  { %s3668_s0 = scalar_lea.vmem %s48_s29, 3072  ;;  %p3673_p6 = scmp.lt.s32.totalorder %s48_s29, %s48_s29 }
  0x2f   :  { %p3669_p5 = scmp.ne.s32.totalorder %s48_s29, %s3668_s0  ;;  %p3674_p7 = scmp.lt.s32.totalorder %s3668_s0, %s3668_s0 }
  0x31   :  { %p3675_p8 = por %p3674_p7, %p3673_p6 }
  0x33   :  { %p3676_p9 = pnand %p3675_p8, %p3669_p5 }
  0x35   :  { %3679 = shalt.err (!%p3676_p9)
}
  0x36   :  { %53 = dma.hbm_to_vmem [thread:$0]  %s4329_s2, 3072, %s48_s29, [#allocation7], %s3779_s11, %s3779_s11, %s3780_s12  }
  0x37   :  { %s3680_s22 = scalar_lea.hbm %s4331_s4, 1024 }
  0x38   :  { %p3681_p10 = scmp.ne.s32.totalorder %s4331_s4, %s3680_s22  ;;  %p3684_p11 = scmp.lt.u32.totalorder %s3680_s22, %s4331_s4 }
  0x3a   :  { %p3686_p12 = pnand %p3684_p11, %p3681_p10 }
  0x3c   :  { %3689 = shalt.err (!%p3686_p12)
}
  0x3d   :  { %s3690_s28 = scalar_lea.vmem %s3863_s8, 1024  ;;  %p3695_p0 = scmp.lt.s32.totalorder %s3863_s8, %s3863_s8 }
  0x3e   :  { %p3691_p13 = scmp.ne.s32.totalorder %s3863_s8, %s3690_s28  ;;  %p3696_p1 = scmp.lt.s32.totalorder %s3690_s28, %s3690_s28 }
  0x40   :  { %p3697_p2 = por %p3696_p1, %p3695_p0 }
  0x42   :  { %p3698_p3 = pnand %p3697_p2, %p3691_p13 }
  0x44   :  { %3701 = shalt.err (!%p3698_p3)
}
  0x45   :  { %67 = dma.hbm_to_vmem [thread:$0]  %s4331_s4, 1024, %s3863_s8, [#allocation10], %s3782_s1, %s3782_s1, %s3783_s25  }
  0x46   :  { %3768 = dma.done.wait [#allocation4], 512  }
  0x47   :  { %3769 = vsyncadd [#allocation4], 4294966784 }
  0x48   :  { %3770 = dma.done.wait [#allocation7], 6144  }
  0x49   :  { %3771 = vsyncadd [#allocation7], 4294961152 }
  0x4a   :  { %3772 = dma.done.wait [#allocation10], 1024  }
  0x4b   :  { %3773 = vsyncadd [#allocation10], 4294966272  ;;  %v3786_v0 = vmov 0   ;;  %v3371_v1 = vld [vmem:[#allocation6 + $0x4] ss:$12 sps:$4 sm:$0xff]   ;;  %v461_v25 = vld [vmem:[#allocation8 + $0x9c] sm:$0xff] }
  0x4c   :  { %327 = vmatprep.mubr.bf16.mxu1 %v3786_v0  ;;  %627 = vmatprep.mubr.bf16.mxu0 %v3786_v0  ;;  %v3373_v2 = vld [vmem:[#allocation6] ss:$12 sps:$4 sm:$0xff]   ;;  %v3902_v3 = vld [vmem:[#allocation8 + $0x4] ss:$12 sps:$4 sm:$0xff]   ;;  %v3377_v5 = vld [vmem:[#allocation6 + $0x1c] ss:$12 sps:$4 sm:$0xff]  }
  0x4d   :  { %295 = vmatprep.subr.bf16.mxu1 %v3371_v1  ;;  %v3904_v4 = vld [vmem:[#allocation8] ss:$12 sps:$4 sm:$0xff]   ;;  %v3379_v6 = vld [vmem:[#allocation6 + $0x18] ss:$12 sps:$4 sm:$0xff]   ;;  %595 = vmatprep.subr.bf16.mxu0 %v3902_v3  ;;  %v3907_v7 = vld [vmem:[#allocation8 + $0x1c] ss:$12 sps:$4 sm:$0xff]  }
  0x4e   :  { %296 = vmatpush1.bf16.msra.mxu1 %v3373_v2  ;;  %596 = vmatpush1.bf16.msra.mxu0 %v3904_v4  ;;  %v3910_v8 = vld [vmem:[#allocation8 + $0x18] ss:$12 sps:$4 sm:$0xff]   ;;  %v3383_v9 = vld [vmem:[#allocation6 + $0x34] ss:$12 sps:$4 sm:$0xff]   ;;  %v3385_v10 = vld [vmem:[#allocation6 + $0x30] ss:$12 sps:$4 sm:$0xff]   ;;  %v128_v2 = vlaneseq }
  0x4f   :  { %297 = vmatprep.subr.bf16.mxu1 %v3377_v5  ;;  %597 = vmatprep.subr.bf16.mxu0 %v3907_v7  ;;  %v3913_v11 = vld [vmem:[#allocation8 + $0x34] ss:$12 sps:$4 sm:$0xff]   ;;  %v3389_v12 = vld [vmem:[#allocation6 + $0x4c] ss:$12 sps:$4 sm:$0xff]   ;;  %v3916_v13 = vld [vmem:[#allocation8 + $0x30] ss:$12 sps:$4 sm:$0xff]  }
  0x50   :  { %v3919_v14 = vld [vmem:[#allocation8 + $0x4c] ss:$12 sps:$4 sm:$0xff]   ;;  %v3391_v15 = vld [vmem:[#allocation6 + $0x48] ss:$12 sps:$4 sm:$0xff]   ;;  %v3395_v16 = vld [vmem:[#allocation6 + $0x64] ss:$12 sps:$4 sm:$0xff]  }
  0x51   :  { %v3922_v17 = vld [vmem:[#allocation8 + $0x48] ss:$12 sps:$4 sm:$0xff]   ;;  %v3925_v18 = vld [vmem:[#allocation8 + $0x64] ss:$12 sps:$4 sm:$0xff]   ;;  %v3397_v19 = vld [vmem:[#allocation6 + $0x60] ss:$12 sps:$4 sm:$0xff]  }
  0x52   :  { %298 = vmatpush1.bf16.msra.mxu1 %v3379_v6  ;;  %598 = vmatpush1.bf16.msra.mxu0 %v3910_v8  ;;  %v3401_v20 = vld [vmem:[#allocation6 + $0x7c] ss:$12 sps:$4 sm:$0xff]   ;;  %v3928_v21 = vld [vmem:[#allocation8 + $0x60] ss:$12 sps:$4 sm:$0xff]   ;;  %v3403_v22 = vld [vmem:[#allocation6 + $0x78] ss:$12 sps:$4 sm:$0xff]  }
  0x53   :  { %299 = vmatprep.subr.bf16.mxu1 %v3383_v9  ;;  %599 = vmatprep.subr.bf16.mxu0 %v3913_v11  ;;  %v3930_v23 = vld [vmem:[#allocation8 + $0x7c] ss:$12 sps:$4 sm:$0xff]   ;;  %v459_v24 = vld [vmem:[#allocation8 + $0x90] sm:$0xff]  ;;  %v3934_v27 = vld [vmem:[#allocation8 + $0x78] ss:$12 sps:$4 sm:$0xff]   ;;  %v3787_v38 = vmov 0.0|0.0  }
  0x54   :  { %v3407_v26 = vld [vmem:[#allocation6 + $0x94] ss:$12 sps:$4 sm:$0xff]   ;;  %v3937_v28 = vcombine.high %v459_v24, %v461_v25  ;;  %v3409_v29 = vld [vmem:[#allocation6 + $0x90] ss:$12 sps:$4 sm:$0xff]   ;;  %v3412_v30 = vld [vmem:[#allocation6 + $0xac] ss:$12 sps:$4 sm:$0xff]   ;;  %v3940_v31 = vcombine.low %v459_v24, %v461_v25 }
  0x55   :  { %v3943_v32 = vld [vmem:[#allocation8 + $0xac] ss:$12 sps:$4 sm:$0xff]   ;;  %v3414_v33 = vld [vmem:[#allocation6 + $0xa8] ss:$12 sps:$4 sm:$0xff]   ;;  %v3418_v36 = vld [vmem:[#allocation3] sm:$0xff]   ;;  %v3788_v49 = vmov 0.0  }
  0x56   :  { %300 = vmatpush1.bf16.msra.mxu1 %v3385_v10  ;;  %600 = vmatpush1.bf16.msra.mxu0 %v3916_v13  ;;  %v3419_v34 = vld [vmem:[#allocation6 + $0x8] ss:$12 sps:$4 sm:$0xff]   ;;  %v3420_v37 = vld [vmem:[#allocation6 + $0x20] ss:$12 sps:$4 sm:$0xff]   ;;  %v3422_v39 = vld [vmem:[#allocation6 + $0x38] ss:$12 sps:$4 sm:$0xff]  }
  0x57   :  { %301 = vmatprep.subr.bf16.mxu1 %v3389_v12  ;;  %601 = vmatprep.subr.bf16.mxu0 %v3919_v14  ;;  %v3946_v35 = vld [vmem:[#allocation8 + $0xa8] ss:$12 sps:$4 sm:$0xff]   ;;  %v3423_v41 = vld [vmem:[#allocation6 + $0x50] ss:$12 sps:$4 sm:$0xff]   ;;  %v3426_v44 = vld [vmem:[#allocation6 + $0x80] ss:$12 sps:$4 sm:$0xff]  }
  0x58   :  { %v3421_v40 = vld [vmem:[#allocation3 + $0x8] sm:$0xff]   ;;  %v3424_v43 = vld [vmem:[#allocation3 + $0x10] sm:$0xff]   ;;  %v3428_v45 = vld [vmem:[#allocation6 + $0x98] ss:$12 sps:$4 sm:$0xff]   ;;  %vm3789_vm0 = vmmov 0   ;;  %s3791_s30 = smov [#allocation11]  }
  0x59   :  { %v3425_v42 = vld [vmem:[#allocation6 + $0x68] ss:$12 sps:$4 sm:$0xff]   ;;  %v3427_v46 = vld [vmem:[#allocation3 + $0x18] sm:$0xff]   ;;  %v3431_v50 = vld [vmem:[#allocation8 + $0x20] ss:$12 sps:$4 sm:$0xff]   ;;  %s2738_s8 = sshll.u32 %s3791_s30, 4  ;;  %s2739_s8 = int_to_ptr.vmem [resolvable:$true] %s2738_s8 }
  0x5a   :  { %302 = vmatpush1.bf16.msra.mxu1 %v3391_v15  ;;  %602 = vmatpush1.bf16.msra.mxu0 %v3922_v17  ;;  %v3429_v47 = vld [vmem:[#allocation6 + $0xb0] ss:$12 sps:$4 sm:$0xff]   ;;  %v3430_v48 = vld [vmem:[#allocation8 + $0x8] ss:$12 sps:$4 sm:$0xff]   ;;  %v3432_v51 = vld [vmem:[#allocation8 + $0x38] ss:$12 sps:$4 sm:$0xff]  }
  0x5b   :  { %303 = vmatprep.subr.bf16.mxu1 %v3395_v16  ;;  %603 = vmatprep.subr.bf16.mxu0 %v3925_v18  ;;  %v3433_v52 = vld [vmem:[#allocation8 + $0x50] ss:$12 sps:$4 sm:$0xff]   ;;  %v3434_v53 = vld [vmem:[#allocation8 + $0x68] ss:$12 sps:$4 sm:$0xff]   ;;  %v3435_v54 = vld [vmem:[#allocation8 + $0x80] ss:$12 sps:$4 sm:$0xff]  }
  0x5c   :  { %v3436_v55 = vld [vmem:[#allocation8 + $0x98] ss:$12 sps:$4 sm:$0xff]   ;;  %v3437_v56 = vld [vmem:[#allocation8 + $0xb0] ss:$12 sps:$4 sm:$0xff]   ;;  %v3438_v57 = vld [vmem:[#allocation8 + $0x8] ss:$12 sps:$4 sm:$0xff]  }
  0x5d   :  { %v3439_v58 = vld [vmem:[#allocation8 + $0x20] ss:$12 sps:$4 sm:$0xff]   ;;  %v3440_v59 = vld [vmem:[#allocation8 + $0x38] ss:$12 sps:$4 sm:$0xff]   ;;  %v3441_v60 = vld [vmem:[#allocation8 + $0x50] ss:$12 sps:$4 sm:$0xff]  }
  0x5e   :  { %304 = vmatpush1.bf16.msra.mxu1 %v3397_v19  ;;  %604 = vmatpush1.bf16.msra.mxu0 %v3928_v21  ;;  %v3442_v61 = vld [vmem:[#allocation8 + $0x68] ss:$12 sps:$4 sm:$0xff]   ;;  %v3443_v62 = vld [vmem:[#allocation8 + $0x80] ss:$12 sps:$4 sm:$0xff]   ;;  %v3444_v63 = vld [vmem:[#allocation8 + $0x98] ss:$12 sps:$4 sm:$0xff]  }
  0x5f   :  { %305 = vmatprep.subr.bf16.mxu1 %v3401_v20  ;;  %605 = vmatprep.subr.bf16.mxu0 %v3930_v23  ;;  %v3445_v1 = vld [vmem:[#allocation8 + $0xb0] ss:$12 sps:$4 sm:$0xff]   ;;  %v126_v6 = vld [vmem:[%s4330_s3] sm:$0x7]  ;;  %s3790_s3 = smov [#allocation12]  }
  0x60   :  { %s2751_s29 = sshll.u32 %s3790_s3, 4  ;;  %s2752_s29 = int_to_ptr.vmem [resolvable:$true] %s2751_s29 }
  0x61   :  { %s3702_s9 = scalar_lea.vmem %s2752_s29, 128  ;;  %p3707_p5 = scmp.lt.s32.totalorder %s2752_s29, %s2752_s29 }
  0x62   :  { %306 = vmatpush1.bf16.msra.mxu1 %v3403_v22  ;;  %606 = vmatpush1.bf16.msra.mxu0 %v3934_v27  ;;  %p3703_p4 = scmp.ne.s32.totalorder %s2752_s29, %s3702_s9  ;;  %p3708_p6 = scmp.lt.s32.totalorder %s3702_s9, %s3702_s9 }
  0x63   :  { %307 = vmatprep.subr.bf16.mxu1 %v3407_v26  ;;  %607 = vmatprep.subr.bf16.mxu0 %v3937_v28 }
  0x64   :  { %p3709_p7 = por %p3708_p6, %p3707_p5 }
  0x66   :  { %308 = vmatpush1.bf16.msra.mxu1 %v3409_v29  ;;  %608 = vmatpush1.bf16.msra.mxu0 %v3940_v31  ;;  %p3710_p8 = pnand %p3709_p7, %p3703_p4 }
  0x67   :  { %309 = vmatprep.subr.bf16.mxu1 %v3412_v30  ;;  %609 = vmatprep.subr.bf16.mxu0 %v3943_v32 }
  0x6a   :  { %310 = vmatpush1.bf16.msra.mxu1 %v3414_v33  ;;  %610 = vmatpush1.bf16.msra.mxu0 %v3946_v35 }
  0x6b   :  { %3148 = vmatprep.subr.bf16.mxu1 %v3419_v34  ;;  %859 = vmatprep.subr.bf16.mxu0 %v3902_v3 }
  0x6d   :  { %328 = vmatmul.mubr.bf16.vlgmr.msra.gmra.mrb[0].mxu1 %v3418_v36  ;;  %628 = vmatmul.mubr.bf16.vlgmr.msra.gmra.mrb[0].mxu0 %v3787_v38 }
  0x6e   :  { %3149 = vmatpush3.bf16.msra.mxu1 %v3419_v34  ;;  %337 = vmatprep.mubr.bf16.mxu1 %v3786_v0 }
  0x6f   :  { %3150 = vmatprep.subr.bf16.mxu1 %v3420_v37  ;;  %860 = vmatpush1.bf16.msra.mxu0 %v3904_v4 }
  0x70   :  { %891 = vmatprep.mubr.bf16.mxu0 %v3786_v0  ;;  %861 = vmatprep.subr.bf16.mxu0 %v3907_v7 }
  0x72   :  { %3151 = vmatpush3.bf16.msra.mxu1 %v3420_v37 }
  0x73   :  { %3152 = vmatprep.subr.bf16.mxu1 %v3422_v39  ;;  %862 = vmatpush1.bf16.msra.mxu0 %v3910_v8 }
  0x74   :  { %863 = vmatprep.subr.bf16.mxu0 %v3913_v11 }
  0x75   :  { %338 = vmatmul.mubr.bf16.gmra.mrb[4].mxu1 %v3421_v40 }
  0x76   :  { %3153 = vmatpush3.bf16.msra.mxu1 %v3422_v39  ;;  %347 = vmatprep.mubr.bf16.mxu1 %v3786_v0 }
  0x77   :  { %3154 = vmatprep.subr.bf16.mxu1 %v3423_v41  ;;  %864 = vmatpush1.bf16.msra.mxu0 %v3916_v13 }
  0x78   :  { %865 = vmatprep.subr.bf16.mxu0 %v3919_v14 }
  0x7a   :  { %3155 = vmatpush3.bf16.msra.mxu1 %v3423_v41 }
  0x7b   :  { %3156 = vmatprep.subr.bf16.mxu1 %v3425_v42  ;;  %866 = vmatpush1.bf16.msra.mxu0 %v3922_v17 }
  0x7c   :  { %867 = vmatprep.subr.bf16.mxu0 %v3925_v18 }
  0x7d   :  { %348 = vmatmul.mubr.bf16.gmra.mrb[8].mxu1 %v3424_v43 }
  0x7e   :  { %3157 = vmatpush3.bf16.msra.mxu1 %v3425_v42  ;;  %357 = vmatprep.mubr.bf16.mxu1 %v3786_v0 }
  0x7f   :  { %3158 = vmatprep.subr.bf16.mxu1 %v3426_v44  ;;  %868 = vmatpush1.bf16.msra.mxu0 %v3928_v21 }
  0x80   :  { %869 = vmatprep.subr.bf16.mxu0 %v3930_v23 }
  0x82   :  { %3159 = vmatpush3.bf16.msra.mxu1 %v3426_v44 }
  0x83   :  { %3160 = vmatprep.subr.bf16.mxu1 %v3428_v45  ;;  %870 = vmatpush1.bf16.msra.mxu0 %v3934_v27 }
  0x84   :  { %871 = vmatprep.subr.bf16.mxu0 %v3937_v28 }
  0x85   :  { %358 = vmatmul.mubr.bf16.gmra.mrb[12].mxu1 %v3427_v46 }
  0x86   :  { %3161 = vmatpush3.bf16.msra.mxu1 %v3428_v45  ;;  %3164 = vmatprep.mubr.bf16.mxu1 %v3418_v36 }
  0x87   :  { %3162 = vmatprep.subr.bf16.mxu1 %v3429_v47  ;;  %872 = vmatpush1.bf16.msra.mxu0 %v3940_v31 }
  0x88   :  { %873 = vmatprep.subr.bf16.mxu0 %v3943_v32 }
  0x8a   :  { %3163 = vmatpush3.bf16.msra.mxu1 %v3429_v47 }
  0x8b   :  { %3172 = vmatprep.subr.bf16.mxu1 %v3788_v49  ;;  %874 = vmatpush1.bf16.msra.mxu0 %v3946_v35 }
  0x8c   :  { %1124 = vmatprep.subr.bf16.mxu0 %v3902_v3  ;;  %v129_v3 = vshrl.u32 %v128_v2, 7 }
  0x8d   :  { %3165 = vmatmul.mubr.bf16.vlgmr.msra.gmra.mrb[16].mxu1 %v3421_v40 }
  0x8e   :  { %3173 = vmatpush3.bf16.msra.mxu1 %v3430_v48  ;;  %3168 = vmatprep.mubr.bf16.mxu1 %v3424_v43  ;;  %v130_v5 = vsub.s32 0, %v129_v3  ;;  %v134_v9 = vsub.s32 1, %v129_v3 }
  0x8f   :  { %3174 = vmatprep.subr.bf16.mxu1 %v3788_v49 }
  0x90   :  { %v131_v10 = vrot.slane %v126_v6, %v130_v5  ;;  %v135_v12 = vrot.slane %v126_v6, %v134_v9 }
  0x92   :  { %3175 = vmatpush3.bf16.msra.mxu1 %v3431_v50 }
  0x93   :  { %3176 = vmatprep.subr.bf16.mxu1 %v3788_v49 }
  0x95   :  { %3169 = vmatmul.mubr.bf16.gmra.mrb[20].mxu1 %v3427_v46 }
  0x96   :  { %3177 = vmatpush3.bf16.msra.mxu1 %v3432_v51  ;;  %3188 = vmatprep.mubr.msk.bf16.mxu1 %vm3789_vm0, %v3788_v49 }
  0x97   :  { %3178 = vmatprep.subr.bf16.mxu1 %v3788_v49 }
  0x9a   :  { %3179 = vmatpush3.bf16.msra.mxu1 %v3433_v52 }
  0x9b   :  { %3180 = vmatprep.subr.bf16.mxu1 %v3788_v49 }
  0x9e   :  { %3181 = vmatpush3.bf16.msra.mxu1 %v3434_v53 }
  0x9f   :  { %3182 = vmatprep.subr.bf16.mxu1 %v3788_v49 }
  0xa2   :  { %3183 = vmatpush3.bf16.msra.mxu1 %v3435_v54 }
  0xa3   :  { %3184 = vmatprep.subr.bf16.mxu1 %v3788_v49 }
  0xa6   :  { %3185 = vmatpush3.bf16.msra.mxu1 %v3436_v55 }
  0xa7   :  { %3186 = vmatprep.subr.bf16.mxu1 %v3788_v49 }
  0xaa   :  { %3187 = vmatpush3.bf16.msra.mxu1 %v3437_v56 }
  0xab   :  { %3192 = vmatprep.subr.bf16.mxu1 %v3788_v49 }
  0xad   :  { %3189 = vmatmul.mubr.bf16.vlgmr.msra.gmra.mrb[24].mxu1 %v3787_v38 }
  0xae   :  { %3208 = vmatprep.mubr.msk.bf16.mxu1 %vm3789_vm0, %v3788_v49  ;;  %3193 = vmatpush3.bf16.msra.mxu1 %v3438_v57 }
  0xaf   :  { %3194 = vmatprep.subr.bf16.mxu1 %v3788_v49 }
  0xb2   :  { %3195 = vmatpush3.bf16.msra.mxu1 %v3439_v58  ;;  %v138_v58 = vsub.s32 2, %v129_v3 }
  0xb3   :  { %3196 = vmatprep.subr.bf16.mxu1 %v3788_v49 }
  0xb6   :  { %3197 = vmatpush3.bf16.msra.mxu1 %v3440_v59 }
  0xb7   :  { %3198 = vmatprep.subr.bf16.mxu1 %v3788_v49 }
  0xba   :  { %3199 = vmatpush3.bf16.msra.mxu1 %v3441_v60 }
  0xbb   :  { %3200 = vmatprep.subr.bf16.mxu1 %v3788_v49 }
  0xbe   :  { %3201 = vmatpush3.bf16.msra.mxu1 %v3442_v61 }
  0xbf   :  { %3202 = vmatprep.subr.bf16.mxu1 %v3788_v49 }
  0xc2   :  { %3203 = vmatpush3.bf16.msra.mxu1 %v3443_v62 }
  0xc3   :  { %3204 = vmatprep.subr.bf16.mxu1 %v3788_v49 }
  0xc6   :  { %3205 = vmatpush3.bf16.msra.mxu1 %v3444_v63 }
  0xc7   :  { %3206 = vmatprep.subr.bf16.mxu1 %v3788_v49 }
  0xca   :  { %3207 = vmatpush3.bf16.msra.mxu1 %v3445_v1  ;;  %v139_v1 = vrot.slane %v126_v6, %v138_v58 }
  0xcb   :  { %3212 = vmatprep.subr.bf16.mxu1 %v3788_v49 }
 0x140   :  { %v329_v15 = vpop.f32.mrb[0].mxu1  ;;  %v629_v24 = vpop.f32.mrb[0].mxu0 }
 0x141   :  { %v330_v16 = vadd.f32 %v329_v15, %v131_v10  ;;  %v331_v19 = vpop.f32.mrb[1].mxu1  ;;  %v631_v30 = vpop.f32.mrb[1].mxu0 }
 0x142   :  { %v332_v20 = vadd.f32 %v331_v19, %v135_v12  ;;  %v333_v22 = vpop.f32.mrb[2].mxu1  ;;  %v633_v36 = vpop.f32.mrb[2].mxu0 }
 0x143   :  { %v3997_v25 = vadd.f32 %v333_v22, %v131_v10  ;;  %v676_v26 = vadd.f32 %v629_v24, %v330_v16  ;;  %v335_v29 = vpop.f32.mrb[3].mxu1  ;;  %v634_v37 = vpop.f32.mrb[3].mxu0 }
 0x144   :  { %v3999_v33 = vadd.f32 %v335_v29, %v135_v12  ;;  %v683_v34 = vadd.f32 %v631_v30, %v332_v20 }
 0x146   :  { %v2834_v5 = vmul.f32 -1.442695, %v683_v34  ;;  %v2833_v34 = vmul.f32 -1.442695, %v676_v26 }
 0x148   :  { %v339_v38 = vpop.f32.mrb[4].mxu1  ;;  %3531 = vpow2.f32 %v2834_v5 }
 0x149   :  { %v4001_v39 = vadd.f32 %v339_v38, %v131_v10  ;;  %v341_v40 = vpop.f32.mrb[5].mxu1  ;;  %3533 = vpow2.f32 %v2833_v34 }
 0x14a   :  { %v4003_v41 = vadd.f32 %v341_v40, %v135_v12  ;;  %v343_v42 = vpop.f32.mrb[6].mxu1 }
 0x14b   :  { %v4005_v43 = vadd.f32 %v343_v42, %v131_v10  ;;  %v345_v44 = vpop.f32.mrb[7].mxu1 }
 0x14c   :  { %v4007_v45 = vadd.f32 %v345_v44, %v135_v12 }
 0x150   :  { %v349_v46 = vpop.f32.mrb[8].mxu1 }
 0x151   :  { %v4009_v47 = vadd.f32 %v349_v46, %v131_v10  ;;  %v351_v48 = vpop.f32.mrb[9].mxu1 }
 0x152   :  { %v4011_v50 = vadd.f32 %v351_v48, %v135_v12  ;;  %v353_v51 = vpop.f32.mrb[10].mxu1  ;;  %v3532_v37 = vpop.eup %3531 }
 0x153   :  { %v4013_v52 = vadd.f32 %v353_v51, %v131_v10  ;;  %v355_v53 = vpop.f32.mrb[11].mxu1  ;;  %v687_v38 = vadd.f32 1.0, %v3532_v37  ;;  %v3534_v40 = vpop.eup %3533 }
 0x154   :  { %v4015_v54 = vadd.f32 %v355_v53, %v135_v12  ;;  %v680_v42 = vadd.f32 1.0, %v3534_v40 }
 0x155   :  { %3535 = vrcp.f32 %v687_v38 }
 0x156   :  { %3537 = vrcp.f32 %v680_v42 }
 0x158   :  { %v359_v55 = vpop.f32.mrb[12].mxu1 }
 0x159   :  { %v4017_v56 = vadd.f32 %v359_v55, %v131_v10  ;;  %v361_v57 = vpop.f32.mrb[13].mxu1 }
 0x15a   :  { %v4019_v59 = vadd.f32 %v361_v57, %v135_v12  ;;  %v363_v60 = vpop.f32.mrb[14].mxu1 }
 0x15b   :  { %v4021_v61 = vadd.f32 %v363_v60, %v131_v10  ;;  %v365_v62 = vpop.f32.mrb[15].mxu1 }
 0x15c   :  { %v4023_v63 = vadd.f32 %v365_v62, %v135_v12 }
 0x15f   :  { %v3536_v44 = vpop.eup %3535 }
 0x160   :  { %v3166_v2 = vpop.f32.mrb[16].mxu1  ;;  %v3538_v60 = vpop.eup %3537 }
 0x161   :  { %v4025_v9 = vadd.f32 %v3166_v2, %v139_v1  ;;  %v402_v15 = vpop.f32.mrb[17].mxu1  ;;  %v693_v26 = vsub.f32 1.0, %v3538_v60  ;;  %v695_v5 = vmul.f32 0.0, %v3538_v60  ;;  %v4082_v60 = vld [vmem:[#allocation8] ss:$12 sps:$4 sm:$0xff]  }
 0x162   :  { %v3167_v16 = vpop.f32.mrb[18].mxu1  ;;  %v403_v48 = vadd.f32 %v402_v15, %v139_v1 }
 0x163   :  { %v4027_v19 = vadd.f32 %v3167_v16, %v139_v1  ;;  %v405_v20 = vpop.f32.mrb[19].mxu1 }
 0x164   :  { %v4029_v22 = vadd.f32 %v405_v20, %v139_v1 }
 0x168   :  { %v3170_v3 = vpop.f32.mrb[20].mxu1 }
 0x169   :  { %v4031_v24 = vadd.f32 %v3170_v3, %v139_v1  ;;  %v418_v10 = vpop.f32.mrb[21].mxu1 }
 0x16a   :  { %v4033_v29 = vadd.f32 %v418_v10, %v139_v1  ;;  %v3171_v12 = vpop.f32.mrb[22].mxu1 }
 0x16b   :  { %v4035_v6 = vadd.f32 %v3171_v12, %v139_v1  ;;  %v421_v30 = vpop.f32.mrb[23].mxu1 }
 0x16c   :  { %v4037_v36 = vadd.f32 %v421_v30, %v139_v1 }
 0x180   :  { %v670_v46 = vpop.f32.mrb[24].mxu1 }
 0x181   :  { %v690_v51 = vmul.f32 %v3536_v44, %v670_v46  ;;  %v3190_v53 = vpop.f32.mrb[25].mxu1 }
 0x182   :  { %v673_v55 = vpop.f32.mrb[26].mxu1 }
 0x183   :  { %v691_v57 = vadd.f32 %v690_v51, %v403_v48  ;;  %v3191_v58 = vpop.f32.mrb[27].mxu1 }
 0x185   :  { %3539 = vtanh.f32 %v691_v57 }
 0x18f   :  { %v3540_v62 = vpop.eup %3539 }
 0x190   :  { %v694_v2 = vmul.f32 %v3540_v62, %v693_v26  ;;  %v3457_v26 = vld [vmem:[#allocation8 + $0x8] ss:$12 sps:$4 sm:$0xff]  }
 0x191   :  { %v4086_v62 = vld [vmem:[#allocation8 + $0x1c] ss:$12 sps:$4 sm:$0xff]  }
 0x192   :  { %v4039_v16 = vadd.f32 %v695_v5, %v694_v2  ;;  %v4089_v2 = vld [vmem:[#allocation8 + $0x18] ss:$12 sps:$4 sm:$0xff]   ;;  %v3461_v5 = vld [vmem:[#allocation8 + $0x20] ss:$12 sps:$4 sm:$0xff]  }
 0x194   :  { %v697_v20 = vpack.c.bf16 %v4039_v16, %v4039_v16 }
 0x196   :  { %698 = vst [vmem:[#allocation11] sm:$0xf] %v697_v20  ;;  %892 = vmatmul.mubr.bf16.vlgmr.msra.gmra.mrb[4].mxu0 %v697_v20  ;;  %3209 = vmatmul.mubr.bf16.vlgmr.msra.gmra.mrb[28].mxu1 %v697_v20  ;;  %v4096_v20 = vld [vmem:[#allocation8 + $0x30] ss:$12 sps:$4 sm:$0xff]  }
 0x197   :  { %1125 = vmatpush1.bf16.msra.mxu0 %v3904_v4  ;;  %1156 = vmatprep.mubr.bf16.mxu0 %v3786_v0  ;;  %v3446_v4 = vld [vmem:[#allocation8 + $0x8] ss:$12 sps:$4 sm:$0xff]  }
 0x198   :  { %1126 = vmatprep.subr.bf16.mxu0 %v3907_v7  ;;  %3228 = vmatprep.mubr.msk.bf16.mxu1 %vm3789_vm0, %v3788_v49  ;;  %v3447_v7 = vld [vmem:[#allocation8 + $0x20] ss:$12 sps:$4 sm:$0xff]  }
 0x199   :  { %3213 = vmatpush3.bf16.msra.mxu1 %v3446_v4  ;;  %v3465_v4 = vld [vmem:[#allocation8 + $0x38] ss:$12 sps:$4 sm:$0xff]  }
 0x19a   :  { %3214 = vmatprep.subr.bf16.mxu1 %v3788_v49 }
 0x19b   :  { %1127 = vmatpush1.bf16.msra.mxu0 %v3910_v8  ;;  %v3448_v8 = vld [vmem:[#allocation8 + $0x38] ss:$12 sps:$4 sm:$0xff]  }
 0x19c   :  { %1128 = vmatprep.subr.bf16.mxu0 %v3913_v11  ;;  %v3449_v11 = vld [vmem:[#allocation8 + $0x50] ss:$12 sps:$4 sm:$0xff]  }
 0x19d   :  { %3215 = vmatpush3.bf16.msra.mxu1 %v3447_v7  ;;  %v4100_v7 = vld [vmem:[#allocation8 + $0x4c] ss:$12 sps:$4 sm:$0xff]  }
 0x19e   :  { %3216 = vmatprep.subr.bf16.mxu1 %v3788_v49 }
 0x19f   :  { %1129 = vmatpush1.bf16.msra.mxu0 %v3916_v13  ;;  %v3450_v13 = vld [vmem:[#allocation8 + $0x68] ss:$12 sps:$4 sm:$0xff]  }
 0x1a0   :  { %1130 = vmatprep.subr.bf16.mxu0 %v3919_v14  ;;  %v3451_v14 = vld [vmem:[#allocation8 + $0x80] ss:$12 sps:$4 sm:$0xff]  }
 0x1a1   :  { %3217 = vmatpush3.bf16.msra.mxu1 %v3448_v8  ;;  %v4103_v8 = vld [vmem:[#allocation8 + $0x48] ss:$12 sps:$4 sm:$0xff]  }
 0x1a2   :  { %3218 = vmatprep.subr.bf16.mxu1 %v3788_v49 }
 0x1a3   :  { %1131 = vmatpush1.bf16.msra.mxu0 %v3922_v17  ;;  %v3452_v17 = vld [vmem:[#allocation8 + $0x98] ss:$12 sps:$4 sm:$0xff]  }
 0x1a4   :  { %1132 = vmatprep.subr.bf16.mxu0 %v3925_v18  ;;  %v3453_v18 = vld [vmem:[#allocation8 + $0xb0] ss:$12 sps:$4 sm:$0xff]  }
 0x1a5   :  { %3219 = vmatpush3.bf16.msra.mxu1 %v3449_v11  ;;  %v3469_v11 = vld [vmem:[#allocation8 + $0x50] ss:$12 sps:$4 sm:$0xff]  }
 0x1a6   :  { %3220 = vmatprep.subr.bf16.mxu1 %v3788_v49 }
 0x1a7   :  { %1133 = vmatpush1.bf16.msra.mxu0 %v3928_v21 }
 0x1a8   :  { %1134 = vmatprep.subr.bf16.mxu0 %v3930_v23 }
 0x1a9   :  { %3221 = vmatpush3.bf16.msra.mxu1 %v3450_v13  ;;  %v4107_v13 = vld [vmem:[#allocation8 + $0x64] ss:$12 sps:$4 sm:$0xff]  }
 0x1aa   :  { %3222 = vmatprep.subr.bf16.mxu1 %v3788_v49 }
 0x1ab   :  { %1135 = vmatpush1.bf16.msra.mxu0 %v3934_v27 }
 0x1ac   :  { %1136 = vmatprep.subr.bf16.mxu0 %v3937_v28 }
 0x1ad   :  { %3223 = vmatpush3.bf16.msra.mxu1 %v3451_v14  ;;  %v4110_v14 = vld [vmem:[#allocation8 + $0x60] ss:$12 sps:$4 sm:$0xff]  }
 0x1ae   :  { %3224 = vmatprep.subr.bf16.mxu1 %v3788_v49 }
 0x1af   :  { %1137 = vmatpush1.bf16.msra.mxu0 %v3940_v31 }
 0x1b0   :  { %1138 = vmatprep.subr.bf16.mxu0 %v3943_v32 }
 0x1b1   :  { %3225 = vmatpush3.bf16.msra.mxu1 %v3452_v17  ;;  %v3473_v17 = vld [vmem:[#allocation8 + $0x68] ss:$12 sps:$4 sm:$0xff]  }
 0x1b2   :  { %3226 = vmatprep.subr.bf16.mxu1 %v3788_v49 }
 0x1b3   :  { %1139 = vmatpush1.bf16.msra.mxu0 %v3946_v35 }
 0x1b5   :  { %3227 = vmatpush3.bf16.msra.mxu1 %v3453_v18  ;;  %v4113_v18 = vld [vmem:[#allocation8 + $0x7c] ss:$12 sps:$4 sm:$0xff]  }
 0x1b6   :  { %3232 = vmatprep.subr.bf16.mxu1 %v3788_v49 }
 0x269   :  { %v893_v21 = vpop.f32.mrb[4].mxu0  ;;  %v934_v23 = vpop.f32.mrb[28].mxu1 }
 0x26a   :  { %v940_v27 = vadd.f32 %v893_v21, %v3997_v25  ;;  %v895_v28 = vpop.f32.mrb[5].mxu0  ;;  %v3210_v32 = vpop.f32.mrb[29].mxu1  ;;  %v4116_v21 = vld [vmem:[#allocation8 + $0x78] ss:$12 sps:$4 sm:$0xff]  }
 0x26b   :  { %v947_v1 = vadd.f32 %v895_v28, %v3999_v33  ;;  %v897_v15 = vpop.f32.mrb[6].mxu0  ;;  %v937_v3 = vpop.f32.mrb[30].mxu1  ;;  %v3612_v28 = vld [vmem:[#allocation8 + $0x9c] sm:$0xff] }
 0x26c   :  { %v898_v10 = vpop.f32.mrb[7].mxu0  ;;  %v3211_v12 = vpop.f32.mrb[31].mxu1  ;;  %v2859_v34 = vmul.f32 -1.442695, %v940_v27  ;;  %v3611_v27 = vld [vmem:[#allocation8 + $0x90] sm:$0xff] }
 0x26d   :  { %v2860_v30 = vmul.f32 -1.442695, %v947_v1  ;;  %v2906_v32 = vcombine.high %v3611_v27, %v3612_v28  ;;  %v3479_v1 = vld [vmem:[#allocation8 + $0x98] ss:$12 sps:$4 sm:$0xff]   ;;  %v3480_v15 = vld [vmem:[#allocation8 + $0xb0] ss:$12 sps:$4 sm:$0xff]  }
 0x26e   :  { %v3613_v3 = vld [vmem:[#allocation8 + $0xac] ss:$12 sps:$4 sm:$0xff]   ;;  %v3484_v27 = vld [vmem:[#allocation8 + $0x50] ss:$12 sps:$4 sm:$0xff]   ;;  %v3485_v28 = vld [vmem:[#allocation8 + $0x68] ss:$12 sps:$4 sm:$0xff]  }
 0x26f   :  { %3541 = vpow2.f32 %v2860_v30 }
 0x270   :  { %3543 = vpow2.f32 %v2859_v34 }
 0x279   :  { %v3542_v37 = vpop.eup %3541 }
 0x27a   :  { %v951_v38 = vadd.f32 1.0, %v3542_v37  ;;  %v3544_v40 = vpop.eup %3543 }
 0x27b   :  { %v944_v42 = vadd.f32 1.0, %v3544_v40 }
 0x27c   :  { %3545 = vrcp.f32 %v951_v38 }
 0x27d   :  { %3547 = vrcp.f32 %v944_v42 }
 0x286   :  { %v3546_v44 = vpop.eup %3545 }
 0x287   :  { %v954_v25 = vmul.f32 %v3546_v44, %v934_v23  ;;  %v3548_v33 = vpop.eup %3547  ;;  %v3477_v23 = vld [vmem:[#allocation8 + $0x80] ss:$12 sps:$4 sm:$0xff]  }
 0x288   :  { %v957_v48 = vsub.f32 1.0, %v3548_v33  ;;  %v959_v55 = vmul.f32 %v3548_v33, %v4039_v16  ;;  %v4093_v16 = vld [vmem:[#allocation8 + $0x34] ss:$12 sps:$4 sm:$0xff]  }
 0x289   :  { %v955_v46 = vadd.f32 %v954_v25, %v4029_v22  ;;  %v4080_v22 = vld [vmem:[#allocation8 + $0x4] ss:$12 sps:$4 sm:$0xff]  }
 0x28a   :  { %1389 = vmatprep.subr.bf16.mxu0 %v4080_v22 }
 0x28b   :  { %3549 = vtanh.f32 %v955_v46 }
 0x295   :  { %v3550_v51 = vpop.eup %3549 }
 0x296   :  { %v958_v53 = vmul.f32 %v3550_v51, %v957_v48 }
 0x298   :  { %v4073_v57 = vadd.f32 %v959_v55, %v958_v53 }
 0x29a   :  { %v961_v58 = vpack.c.bf16 %v4073_v57, %v4073_v57 }
 0x29c   :  { %963 = vst [vmem:[#allocation11 + $0x4] sm:$0xf] %v961_v58  ;;  %1157 = vmatmul.mubr.bf16.vlgmr.msra.gmra.mrb[8].mxu0 %v961_v58  ;;  %3229 = vmatmul.mubr.bf16.vlgmr.msra.gmra.mrb[32].mxu1 %v961_v58 }
 0x29d   :  { %1421 = vmatprep.mubr.bf16.mxu0 %v3786_v0  ;;  %3248 = vmatprep.mubr.msk.bf16.mxu1 %vm3789_vm0, %v3788_v49 }
 0x29e   :  { %1390 = vmatpush1.bf16.msra.mxu0 %v4082_v60  ;;  %3233 = vmatpush3.bf16.msra.mxu1 %v3457_v26 }
 0x29f   :  { %3234 = vmatprep.subr.bf16.mxu1 %v3788_v49  ;;  %1391 = vmatprep.subr.bf16.mxu0 %v4086_v62 }
 0x2a2   :  { %1392 = vmatpush1.bf16.msra.mxu0 %v4089_v2  ;;  %3235 = vmatpush3.bf16.msra.mxu1 %v3461_v5 }
 0x2a3   :  { %3236 = vmatprep.subr.bf16.mxu1 %v3788_v49  ;;  %1393 = vmatprep.subr.bf16.mxu0 %v4093_v16 }
 0x2a6   :  { %1394 = vmatpush1.bf16.msra.mxu0 %v4096_v20  ;;  %3237 = vmatpush3.bf16.msra.mxu1 %v3465_v4 }
 0x2a7   :  { %3238 = vmatprep.subr.bf16.mxu1 %v3788_v49  ;;  %1395 = vmatprep.subr.bf16.mxu0 %v4100_v7 }
 0x2aa   :  { %1396 = vmatpush1.bf16.msra.mxu0 %v4103_v8  ;;  %3239 = vmatpush3.bf16.msra.mxu1 %v3469_v11 }
 0x2ab   :  { %3240 = vmatprep.subr.bf16.mxu1 %v3788_v49  ;;  %1397 = vmatprep.subr.bf16.mxu0 %v4107_v13 }
 0x2ae   :  { %1398 = vmatpush1.bf16.msra.mxu0 %v4110_v14  ;;  %3241 = vmatpush3.bf16.msra.mxu1 %v3473_v17 }
 0x2af   :  { %1399 = vmatprep.subr.bf16.mxu0 %v4113_v18  ;;  %3242 = vmatprep.subr.bf16.mxu1 %v3788_v49 }
 0x2b2   :  { %1400 = vmatpush1.bf16.msra.mxu0 %v4116_v21  ;;  %3243 = vmatpush3.bf16.msra.mxu1 %v3477_v23  ;;  %v3483_v23 = vld [vmem:[#allocation8 + $0x38] ss:$12 sps:$4 sm:$0xff]  }
 0x2b3   :  { %1401 = vmatprep.subr.bf16.mxu0 %v2906_v32  ;;  %3244 = vmatprep.subr.bf16.mxu1 %v3788_v49  ;;  %v4153_v32 = vld [vmem:[#allocation8 + $0x90] ss:$12 sps:$4 sm:$0xff]  }
 0x2b6   :  { %1402 = vmatpush1.bf16.msra.mxu0 %v3940_v31  ;;  %3245 = vmatpush3.bf16.msra.mxu1 %v3479_v1  ;;  %v4155_v1 = vld [vmem:[#allocation8 + $0x94] ss:$12 sps:$4 sm:$0xff]  }
 0x2b7   :  { %1403 = vmatprep.subr.bf16.mxu0 %v3613_v3  ;;  %3246 = vmatprep.subr.bf16.mxu1 %v3788_v49  ;;  %v4157_v3 = vld [vmem:[#allocation8 + $0xac] ss:$12 sps:$4 sm:$0xff]  }
 0x2ba   :  { %1404 = vmatpush1.bf16.msra.mxu0 %v3946_v35  ;;  %3247 = vmatpush3.bf16.msra.mxu1 %v3480_v15  ;;  %v3486_v15 = vld [vmem:[#allocation8 + $0x80] ss:$12 sps:$4 sm:$0xff]  }
 0x2bb   :  { %1654 = vmatprep.subr.bf16.mxu0 %v4080_v22  ;;  %3252 = vmatprep.subr.bf16.mxu1 %v3788_v49 }
 0x36f   :  { %v1158_v10 = vpop.f32.mrb[8].mxu0  ;;  %v1199_v12 = vpop.f32.mrb[32].mxu1 }
 0x370   :  { %v1205_v30 = vadd.f32 %v1158_v10, %v4001_v39  ;;  %v1160_v34 = vpop.f32.mrb[9].mxu0  ;;  %v3230_v37 = vpop.f32.mrb[33].mxu1  ;;  %v4162_v10 = vld [vmem:[#allocation8 + $0xa8] ss:$12 sps:$4 sm:$0xff]  }
 0x371   :  { %v1212_v31 = vadd.f32 %v1160_v34, %v4003_v41  ;;  %v1162_v38 = vpop.f32.mrb[10].mxu0  ;;  %v1202_v40 = vpop.f32.mrb[34].mxu1 }
 0x372   :  { %v1163_v42 = vpop.f32.mrb[11].mxu0  ;;  %v3231_v44 = vpop.f32.mrb[35].mxu1  ;;  %v2885_v35 = vmul.f32 -1.442695, %v1205_v30  ;;  %v3494_v30 = vld [vmem:[#allocation8 + $0xb0] ss:$12 sps:$4 sm:$0xff]  }
 0x373   :  { %v2886_v25 = vmul.f32 -1.442695, %v1212_v31 }
 0x375   :  { %3551 = vpow2.f32 %v2886_v25 }
 0x376   :  { %3553 = vpow2.f32 %v2885_v35 }
 0x37f   :  { %v3552_v46 = vpop.eup %3551 }
 0x380   :  { %v1216_v33 = vadd.f32 1.0, %v3552_v46  ;;  %v3554_v48 = vpop.eup %3553 }
 0x381   :  { %v1209_v51 = vadd.f32 1.0, %v3554_v48 }
 0x382   :  { %3555 = vrcp.f32 %v1216_v33 }
 0x383   :  { %3557 = vrcp.f32 %v1209_v51 }
 0x38c   :  { %v3556_v53 = vpop.eup %3555 }
 0x38d   :  { %v1219_v39 = vmul.f32 %v3556_v53, %v1199_v12  ;;  %v3558_v41 = vpop.eup %3557  ;;  %v3490_v12 = vld [vmem:[#allocation8 + $0x98] ss:$12 sps:$4 sm:$0xff]  }
 0x38e   :  { %v1222_v58 = vsub.f32 1.0, %v3558_v41  ;;  %v1224_v4 = vmul.f32 %v3558_v41, %v4073_v57  ;;  %v3482_v57 = vld [vmem:[#allocation8 + $0x20] ss:$12 sps:$4 sm:$0xff]  }
 0x38f   :  { %v1220_v55 = vadd.f32 %v1219_v39, %v4025_v9  ;;  %v3481_v9 = vld [vmem:[#allocation8 + $0x8] ss:$12 sps:$4 sm:$0xff]  }
 0x391   :  { %3559 = vtanh.f32 %v1220_v55 }
 0x39b   :  { %v3560_v26 = vpop.eup %3559 }
 0x39c   :  { %v1223_v5 = vmul.f32 %v3560_v26, %v1222_v58 }
 0x39e   :  { %v4131_v11 = vadd.f32 %v1224_v4, %v1223_v5 }
 0x3a0   :  { %v1226_v17 = vpack.c.bf16 %v4131_v11, %v4131_v11 }
 0x3a2   :  { %1228 = vst [vmem:[#allocation11 + $0x8] sm:$0xf] %v1226_v17  ;;  %1422 = vmatmul.mubr.bf16.vlgmr.msra.gmra.mrb[12].mxu0 %v1226_v17  ;;  %3249 = vmatmul.mubr.bf16.vlgmr.msra.gmra.mrb[36].mxu1 %v1226_v17 }
 0x3a3   :  { %1655 = vmatpush1.bf16.msra.mxu0 %v4082_v60  ;;  %1686 = vmatprep.mubr.bf16.mxu0 %v3786_v0 }
 0x3a4   :  { %1656 = vmatprep.subr.bf16.mxu0 %v4086_v62  ;;  %3268 = vmatprep.mubr.msk.bf16.mxu1 %vm3789_vm0, %v3788_v49 }
 0x3a5   :  { %3253 = vmatpush3.bf16.msra.mxu1 %v3481_v9 }
 0x3a6   :  { %3254 = vmatprep.subr.bf16.mxu1 %v3788_v49 }
 0x3a7   :  { %1657 = vmatpush1.bf16.msra.mxu0 %v4089_v2 }
 0x3a8   :  { %1658 = vmatprep.subr.bf16.mxu0 %v4093_v16 }
 0x3a9   :  { %3255 = vmatpush3.bf16.msra.mxu1 %v3482_v57 }
 0x3aa   :  { %3256 = vmatprep.subr.bf16.mxu1 %v3788_v49 }
 0x3ab   :  { %1659 = vmatpush1.bf16.msra.mxu0 %v4096_v20 }
 0x3ac   :  { %1660 = vmatprep.subr.bf16.mxu0 %v4100_v7 }
 0x3ad   :  { %3257 = vmatpush3.bf16.msra.mxu1 %v3483_v23  ;;  %v3497_v23 = vld [vmem:[#allocation8 + $0x38] ss:$12 sps:$4 sm:$0xff]  }
 0x3ae   :  { %3258 = vmatprep.subr.bf16.mxu1 %v3788_v49 }
 0x3af   :  { %1661 = vmatpush1.bf16.msra.mxu0 %v4103_v8 }
 0x3b0   :  { %1662 = vmatprep.subr.bf16.mxu0 %v4107_v13 }
 0x3b1   :  { %3259 = vmatpush3.bf16.msra.mxu1 %v3484_v27  ;;  %v3498_v27 = vld [vmem:[#allocation8 + $0x50] ss:$12 sps:$4 sm:$0xff]  }
 0x3b2   :  { %3260 = vmatprep.subr.bf16.mxu1 %v3788_v49 }
 0x3b3   :  { %1663 = vmatpush1.bf16.msra.mxu0 %v4110_v14 }
 0x3b4   :  { %1664 = vmatprep.subr.bf16.mxu0 %v4113_v18 }
 0x3b5   :  { %3261 = vmatpush3.bf16.msra.mxu1 %v3485_v28  ;;  %v3499_v28 = vld [vmem:[#allocation8 + $0x68] ss:$12 sps:$4 sm:$0xff]  }
 0x3b6   :  { %3262 = vmatprep.subr.bf16.mxu1 %v3788_v49 }
 0x3b7   :  { %1665 = vmatpush1.bf16.msra.mxu0 %v4116_v21 }
 0x3b8   :  { %1666 = vmatprep.subr.bf16.mxu0 %v4155_v1 }
 0x3b9   :  { %3263 = vmatpush3.bf16.msra.mxu1 %v3486_v15  ;;  %v3500_v15 = vld [vmem:[#allocation8 + $0x80] ss:$12 sps:$4 sm:$0xff]  }
 0x3ba   :  { %3264 = vmatprep.subr.bf16.mxu1 %v3788_v49 }
 0x3bb   :  { %1667 = vmatpush1.bf16.msra.mxu0 %v4153_v32 }
 0x3bc   :  { %1668 = vmatprep.subr.bf16.mxu0 %v4157_v3 }
 0x3bd   :  { %3265 = vmatpush3.bf16.msra.mxu1 %v3490_v12  ;;  %v3501_v12 = vld [vmem:[#allocation8 + $0x98] ss:$12 sps:$4 sm:$0xff]  }
 0x3be   :  { %3266 = vmatprep.subr.bf16.mxu1 %v3788_v49 }
 0x3bf   :  { %1669 = vmatpush1.bf16.msra.mxu0 %v4162_v10 }
 0x3c0   :  { %1919 = vmatprep.subr.bf16.mxu0 %v4080_v22 }
 0x3c1   :  { %3267 = vmatpush3.bf16.msra.mxu1 %v3494_v30  ;;  %v3502_v30 = vld [vmem:[#allocation8 + $0xb0] ss:$12 sps:$4 sm:$0xff]  }
 0x3c2   :  { %3272 = vmatprep.subr.bf16.mxu1 %v3788_v49 }
 0x475   :  { %v1423_v34 = vpop.f32.mrb[12].mxu0  ;;  %v1464_v37 = vpop.f32.mrb[36].mxu1 }
 0x476   :  { %v1470_v31 = vadd.f32 %v1423_v34, %v4005_v43  ;;  %v1425_v38 = vpop.f32.mrb[13].mxu0  ;;  %v3250_v40 = vpop.f32.mrb[37].mxu1 }
 0x477   :  { %v1477_v42 = vadd.f32 %v1425_v38, %v4007_v45  ;;  %v1427_v44 = vpop.f32.mrb[14].mxu0  ;;  %v1467_v25 = vpop.f32.mrb[38].mxu1 }
 0x478   :  { %v1428_v35 = vpop.f32.mrb[15].mxu0  ;;  %v3251_v46 = vpop.f32.mrb[39].mxu1  ;;  %v2911_v48 = vmul.f32 -1.442695, %v1470_v31 }
 0x479   :  { %v2912_v33 = vmul.f32 -1.442695, %v1477_v42 }
 0x47b   :  { %3561 = vpow2.f32 %v2912_v33 }
 0x47c   :  { %3563 = vpow2.f32 %v2911_v48 }
 0x485   :  { %v3562_v51 = vpop.eup %3561 }
 0x486   :  { %v1481_v53 = vadd.f32 1.0, %v3562_v51  ;;  %v3564_v39 = vpop.eup %3563 }
 0x487   :  { %v1474_v55 = vadd.f32 1.0, %v3564_v39 }
 0x488   :  { %3565 = vrcp.f32 %v1481_v53 }
 0x489   :  { %3567 = vrcp.f32 %v1474_v55 }
 0x492   :  { %v3566_v41 = vpop.eup %3565 }
 0x493   :  { %v1484_v43 = vmul.f32 %v3566_v41, %v1464_v37  ;;  %v3568_v45 = vpop.eup %3567 }
 0x494   :  { %v1487_v26 = vsub.f32 1.0, %v3568_v45  ;;  %v1489_v17 = vmul.f32 %v3568_v45, %v4131_v11  ;;  %v3496_v11 = vld [vmem:[#allocation8 + $0x20] ss:$12 sps:$4 sm:$0xff]  }
 0x495   :  { %v1485_v58 = vadd.f32 %v1484_v43, %v4027_v19  ;;  %v3495_v19 = vld [vmem:[#allocation8 + $0x8] ss:$12 sps:$4 sm:$0xff]  }
 0x497   :  { %3569 = vtanh.f32 %v1485_v58 }
 0x4a1   :  { %v3570_v5 = vpop.eup %3569 }
 0x4a2   :  { %v1488_v4 = vmul.f32 %v3570_v5, %v1487_v26 }
 0x4a4   :  { %v4174_v9 = vadd.f32 %v1489_v17, %v1488_v4 }
 0x4a6   :  { %v1491_v57 = vpack.c.bf16 %v4174_v9, %v4174_v9 }
 0x4a8   :  { %1493 = vst [vmem:[#allocation11 + $0xc] sm:$0xf] %v1491_v57  ;;  %1687 = vmatmul.mubr.bf16.vlgmr.msra.gmra.mrb[16].mxu0 %v1491_v57  ;;  %3269 = vmatmul.mubr.bf16.vlgmr.msra.gmra.mrb[40].mxu1 %v1491_v57  ;;  %v3505_v57 = vld [vmem:[#allocation8 + $0x38] ss:$12 sps:$4 sm:$0xff]  }
 0x4a9   :  { %1920 = vmatpush1.bf16.msra.mxu0 %v4082_v60  ;;  %1951 = vmatprep.mubr.bf16.mxu0 %v3786_v0 }
 0x4aa   :  { %1921 = vmatprep.subr.bf16.mxu0 %v4086_v62  ;;  %3288 = vmatprep.mubr.msk.bf16.mxu1 %vm3789_vm0, %v3788_v49 }
 0x4ab   :  { %3273 = vmatpush3.bf16.msra.mxu1 %v3495_v19  ;;  %v3506_v19 = vld [vmem:[#allocation8 + $0x50] ss:$12 sps:$4 sm:$0xff]  }
 0x4ac   :  { %3274 = vmatprep.subr.bf16.mxu1 %v3788_v49 }
 0x4ad   :  { %1922 = vmatpush1.bf16.msra.mxu0 %v4089_v2 }
 0x4ae   :  { %1923 = vmatprep.subr.bf16.mxu0 %v4093_v16 }
 0x4af   :  { %3275 = vmatpush3.bf16.msra.mxu1 %v3496_v11  ;;  %v3507_v11 = vld [vmem:[#allocation8 + $0x68] ss:$12 sps:$4 sm:$0xff]  }
 0x4b0   :  { %3276 = vmatprep.subr.bf16.mxu1 %v3788_v49 }
 0x4b1   :  { %1924 = vmatpush1.bf16.msra.mxu0 %v4096_v20 }
 0x4b2   :  { %1925 = vmatprep.subr.bf16.mxu0 %v4100_v7 }
 0x4b3   :  { %3277 = vmatpush3.bf16.msra.mxu1 %v3497_v23  ;;  %v3508_v23 = vld [vmem:[#allocation8 + $0x80] ss:$12 sps:$4 sm:$0xff]  }
 0x4b4   :  { %3278 = vmatprep.subr.bf16.mxu1 %v3788_v49 }
 0x4b5   :  { %1926 = vmatpush1.bf16.msra.mxu0 %v4103_v8 }
 0x4b6   :  { %1927 = vmatprep.subr.bf16.mxu0 %v4107_v13 }
 0x4b7   :  { %3279 = vmatpush3.bf16.msra.mxu1 %v3498_v27  ;;  %v3510_v27 = vld [vmem:[#allocation8 + $0xb0] ss:$12 sps:$4 sm:$0xff]  }
 0x4b8   :  { %3280 = vmatprep.subr.bf16.mxu1 %v3788_v49 }
 0x4b9   :  { %1928 = vmatpush1.bf16.msra.mxu0 %v4110_v14 }
 0x4ba   :  { %1929 = vmatprep.subr.bf16.mxu0 %v4113_v18 }
 0x4bb   :  { %3281 = vmatpush3.bf16.msra.mxu1 %v3499_v28 }
 0x4bc   :  { %3282 = vmatprep.subr.bf16.mxu1 %v3788_v49 }
 0x4bd   :  { %1930 = vmatpush1.bf16.msra.mxu0 %v4116_v21 }
 0x4be   :  { %1931 = vmatprep.subr.bf16.mxu0 %v4155_v1 }
 0x4bf   :  { %3283 = vmatpush3.bf16.msra.mxu1 %v3500_v15 }
 0x4c0   :  { %3284 = vmatprep.subr.bf16.mxu1 %v3788_v49 }
 0x4c1   :  { %1932 = vmatpush1.bf16.msra.mxu0 %v4153_v32 }
 0x4c2   :  { %1933 = vmatprep.subr.bf16.mxu0 %v4157_v3 }
 0x4c3   :  { %3285 = vmatpush3.bf16.msra.mxu1 %v3501_v12 }
 0x4c4   :  { %3286 = vmatprep.subr.bf16.mxu1 %v3788_v49 }
 0x4c5   :  { %1934 = vmatpush1.bf16.msra.mxu0 %v4162_v10 }
 0x4c6   :  { %2184 = vmatprep.subr.bf16.mxu0 %v4080_v22 }
 0x4c7   :  { %3287 = vmatpush3.bf16.msra.mxu1 %v3502_v30 }
 0x4c8   :  { %3292 = vmatprep.subr.bf16.mxu1 %v3788_v49 }
 0x57b   :  { %v1688_v34 = vpop.f32.mrb[16].mxu0  ;;  %v1729_v37 = vpop.f32.mrb[40].mxu1 }
 0x57c   :  { %v1735_v31 = vadd.f32 %v1688_v34, %v4009_v47  ;;  %v1690_v38 = vpop.f32.mrb[17].mxu0  ;;  %v3270_v40 = vpop.f32.mrb[41].mxu1 }
 0x57d   :  { %v1742_v42 = vadd.f32 %v1690_v38, %v4011_v50  ;;  %v1692_v44 = vpop.f32.mrb[18].mxu0  ;;  %v1732_v25 = vpop.f32.mrb[42].mxu1 }
 0x57e   :  { %v1693_v35 = vpop.f32.mrb[19].mxu0  ;;  %v3271_v46 = vpop.f32.mrb[43].mxu1  ;;  %v2937_v48 = vmul.f32 -1.442695, %v1735_v31 }
 0x57f   :  { %v2938_v33 = vmul.f32 -1.442695, %v1742_v42 }
 0x581   :  { %3571 = vpow2.f32 %v2938_v33 }
 0x582   :  { %3573 = vpow2.f32 %v2937_v48 }
 0x58b   :  { %v3572_v51 = vpop.eup %3571 }
 0x58c   :  { %v1746_v53 = vadd.f32 1.0, %v3572_v51  ;;  %v3574_v39 = vpop.eup %3573 }
 0x58d   :  { %v1739_v55 = vadd.f32 1.0, %v3574_v39 }
 0x58e   :  { %3575 = vrcp.f32 %v1746_v53 }
 0x58f   :  { %3577 = vrcp.f32 %v1739_v55 }
 0x598   :  { %v3576_v41 = vpop.eup %3575 }
 0x599   :  { %v1749_v47 = vmul.f32 %v3576_v41, %v1729_v37  ;;  %v3578_v50 = vpop.eup %3577 }
 0x59a   :  { %v1752_v58 = vsub.f32 1.0, %v3578_v50  ;;  %v1754_v5 = vmul.f32 %v3578_v50, %v4174_v9  ;;  %v3504_v9 = vld [vmem:[#allocation8 + $0x20] ss:$12 sps:$4 sm:$0xff]  }
 0x59b   :  { %v1750_v43 = vadd.f32 %v1749_v47, %v4033_v29  ;;  %v3503_v29 = vld [vmem:[#allocation8 + $0x8] ss:$12 sps:$4 sm:$0xff]  }
 0x59d   :  { %3579 = vtanh.f32 %v1750_v43 }
 0x5a7   :  { %v3580_v45 = vpop.eup %3579 }
 0x5a8   :  { %v1753_v26 = vmul.f32 %v3580_v45, %v1752_v58 }
 0x5aa   :  { %v4209_v4 = vadd.f32 %v1754_v5, %v1753_v26 }
 0x5ac   :  { %v1756_v17 = vpack.c.bf16 %v4209_v4, %v4209_v4 }
 0x5ae   :  { %1758 = vst [vmem:[#allocation11 + $0x10] sm:$0xf] %v1756_v17  ;;  %1952 = vmatmul.mubr.bf16.vlgmr.msra.gmra.mrb[20].mxu0 %v1756_v17  ;;  %3289 = vmatmul.mubr.bf16.vlgmr.msra.gmra.mrb[44].mxu1 %v1756_v17 }
 0x5af   :  { %2185 = vmatpush1.bf16.msra.mxu0 %v4082_v60  ;;  %2216 = vmatprep.mubr.bf16.mxu0 %v3786_v0 }
 0x5b0   :  { %2186 = vmatprep.subr.bf16.mxu0 %v4086_v62  ;;  %3308 = vmatprep.mubr.msk.bf16.mxu1 %vm3789_vm0, %v3788_v49 }
 0x5b1   :  { %3293 = vmatpush3.bf16.msra.mxu1 %v3503_v29 }
 0x5b2   :  { %3294 = vmatprep.subr.bf16.mxu1 %v3788_v49 }
 0x5b3   :  { %2187 = vmatpush1.bf16.msra.mxu0 %v4089_v2 }
 0x5b4   :  { %2188 = vmatprep.subr.bf16.mxu0 %v4093_v16 }
 0x5b5   :  { %3295 = vmatpush3.bf16.msra.mxu1 %v3504_v9 }
 0x5b6   :  { %3296 = vmatprep.subr.bf16.mxu1 %v3788_v49 }
 0x5b7   :  { %2189 = vmatpush1.bf16.msra.mxu0 %v4096_v20 }
 0x5b8   :  { %2190 = vmatprep.subr.bf16.mxu0 %v4100_v7 }
 0x5b9   :  { %3297 = vmatpush3.bf16.msra.mxu1 %v3505_v57 }
 0x5ba   :  { %3298 = vmatprep.subr.bf16.mxu1 %v3788_v49 }
 0x5bb   :  { %2191 = vmatpush1.bf16.msra.mxu0 %v4103_v8 }
 0x5bc   :  { %2192 = vmatprep.subr.bf16.mxu0 %v4107_v13 }
 0x5bd   :  { %3299 = vmatpush3.bf16.msra.mxu1 %v3506_v19 }
 0x5be   :  { %3300 = vmatprep.subr.bf16.mxu1 %v3788_v49 }
 0x5bf   :  { %2193 = vmatpush1.bf16.msra.mxu0 %v4110_v14 }
 0x5c0   :  { %2194 = vmatprep.subr.bf16.mxu0 %v4113_v18 }
 0x5c1   :  { %3301 = vmatpush3.bf16.msra.mxu1 %v3507_v11 }
 0x5c2   :  { %3302 = vmatprep.subr.bf16.mxu1 %v3788_v49 }
 0x5c3   :  { %2195 = vmatpush1.bf16.msra.mxu0 %v4116_v21 }
 0x5c4   :  { %2196 = vmatprep.subr.bf16.mxu0 %v4155_v1 }
 0x5c5   :  { %3303 = vmatpush3.bf16.msra.mxu1 %v3508_v23 }
 0x5c6   :  { %3304 = vmatprep.subr.bf16.mxu1 %v3788_v49 }
 0x5c7   :  { %2197 = vmatpush1.bf16.msra.mxu0 %v4153_v32 }
 0x5c8   :  { %2198 = vmatprep.subr.bf16.mxu0 %v4157_v3 }
 0x5cb   :  { %2199 = vmatpush1.bf16.msra.mxu0 %v4162_v10 }
 0x5cc   :  { %2449 = vmatprep.subr.bf16.mxu0 %v4080_v22  ;;  %v3509_v22 = vld [vmem:[#allocation8 + $0x98] ss:$12 sps:$4 sm:$0xff]  }
 0x5cd   :  { %3305 = vmatpush3.bf16.msra.mxu1 %v3509_v22 }
 0x5ce   :  { %3306 = vmatprep.subr.bf16.mxu1 %v3788_v49 }
 0x5d1   :  { %3307 = vmatpush3.bf16.msra.mxu1 %v3510_v27 }
 0x5d2   :  { %3312 = vmatprep.subr.bf16.mxu1 %v3788_v49 }
 0x681   :  { %v1953_v28 = vpop.f32.mrb[20].mxu0  ;;  %v1994_v15 = vpop.f32.mrb[44].mxu1 }
 0x682   :  { %v2000_v12 = vadd.f32 %v1953_v28, %v4013_v52  ;;  %v1955_v30 = vpop.f32.mrb[21].mxu0  ;;  %v3290_v34 = vpop.f32.mrb[45].mxu1 }
 0x683   :  { %v2007_v37 = vadd.f32 %v1955_v30, %v4015_v54  ;;  %v1957_v31 = vpop.f32.mrb[22].mxu0  ;;  %v1997_v38 = vpop.f32.mrb[46].mxu1  ;;  %v3523_v30 = vld [vmem:[#allocation9 + $0x18] sm:$0xff]   ;;  %v3524_v34 = vld [vmem:[#allocation9 + $0x20] sm:$0xff]  }
 0x684   :  { %v1958_v40 = vpop.f32.mrb[23].mxu0  ;;  %v3291_v42 = vpop.f32.mrb[47].mxu1  ;;  %v2963_v25 = vmul.f32 -1.442695, %v2000_v12  ;;  %v3520_v12 = vld [vmem:[#allocation11] sm:$0xff]   ;;  %v3526_v31 = vld [vmem:[#allocation9 + $0x30] sm:$0xff]  }
 0x685   :  { %v2964_v44 = vmul.f32 -1.442695, %v2007_v37  ;;  %v3525_v37 = vld [vmem:[#allocation9 + $0x28] sm:$0xff]   ;;  %v3527_v38 = vld [vmem:[#allocation9 + $0x38] sm:$0xff]  }
 0x686   :  { %v3528_v40 = vld [vmem:[#allocation11 + $0x8] sm:$0xff]  }
 0x687   :  { %3581 = vpow2.f32 %v2964_v44 }
 0x688   :  { %3583 = vpow2.f32 %v2963_v25 }
 0x691   :  { %v3582_v35 = vpop.eup %3581 }
 0x692   :  { %v2011_v46 = vadd.f32 1.0, %v3582_v35  ;;  %v3584_v33 = vpop.eup %3583 }
 0x693   :  { %v2004_v48 = vadd.f32 1.0, %v3584_v33 }
 0x694   :  { %3585 = vrcp.f32 %v2011_v46 }
 0x695   :  { %3587 = vrcp.f32 %v2004_v48 }
 0x69e   :  { %v3586_v51 = vpop.eup %3585 }
 0x69f   :  { %v2014_v52 = vmul.f32 %v3586_v51, %v1994_v15  ;;  %v3588_v54 = vpop.eup %3587  ;;  %v3521_v15 = vld [vmem:[#allocation9 + $0x8] sm:$0xff]  }
 0x6a0   :  { %v2017_v39 = vsub.f32 1.0, %v3588_v54  ;;  %v2019_v47 = vmul.f32 %v3588_v54, %v4209_v4 }
 0x6a1   :  { %v2015_v53 = vadd.f32 %v2014_v52, %v4037_v36  ;;  %v3512_v36 = vld [vmem:[#allocation8 + $0x20] ss:$12 sps:$4 sm:$0xff]  }
 0x6a3   :  { %3589 = vtanh.f32 %v2015_v53 }
 0x6ad   :  { %v3590_v55 = vpop.eup %3589 }
 0x6ae   :  { %v2018_v41 = vmul.f32 %v3590_v55, %v2017_v39 }
 0x6b0   :  { %v4244_v43 = vadd.f32 %v2019_v47, %v2018_v41 }
 0x6b2   :  { %v2021_v50 = vpack.c.bf16 %v4244_v43, %v4244_v43 }
 0x6b4   :  { %2023 = vst [vmem:[#allocation11 + $0x14] sm:$0xf] %v2021_v50  ;;  %2217 = vmatmul.mubr.bf16.vlgmr.msra.gmra.mrb[24].mxu0 %v2021_v50  ;;  %3309 = vmatmul.mubr.bf16.vlgmr.msra.gmra.mrb[48].mxu1 %v2021_v50 }
 0x6b5   :  { %2450 = vmatpush1.bf16.msra.mxu0 %v4082_v60  ;;  %2481 = vmatprep.mubr.bf16.mxu0 %v3786_v0  ;;  %v3511_v0 = vld [vmem:[#allocation8 + $0x8] ss:$12 sps:$4 sm:$0xff]   ;;  %v3513_v60 = vld [vmem:[#allocation8 + $0x38] ss:$12 sps:$4 sm:$0xff]  }
 0x6b6   :  { %2451 = vmatprep.subr.bf16.mxu0 %v4086_v62  ;;  %3328 = vmatprep.mubr.msk.bf16.mxu1 %vm3789_vm0, %v3788_v49  ;;  %v3514_v62 = vld [vmem:[#allocation8 + $0x50] ss:$12 sps:$4 sm:$0xff]  }
 0x6b7   :  { %3313 = vmatpush3.bf16.msra.mxu1 %v3511_v0 }
 0x6b8   :  { %3314 = vmatprep.subr.bf16.mxu1 %v3788_v49 }
 0x6b9   :  { %2452 = vmatpush1.bf16.msra.mxu0 %v4089_v2  ;;  %v3515_v2 = vld [vmem:[#allocation8 + $0x68] ss:$12 sps:$4 sm:$0xff]  }
 0x6ba   :  { %2453 = vmatprep.subr.bf16.mxu0 %v4093_v16  ;;  %v3519_v16 = vld [vmem:[#allocation9] sm:$0xff]  }
 0x6bb   :  { %3315 = vmatpush3.bf16.msra.mxu1 %v3512_v36  ;;  %v3529_v42 = vld [vmem:[#allocation11 + $0x10] sm:$0xff]  }
 0x6bc   :  { %3316 = vmatprep.subr.bf16.mxu1 %v3788_v49 }
 0x6bd   :  { %2454 = vmatpush1.bf16.msra.mxu0 %v4096_v20  ;;  %v3516_v20 = vld [vmem:[#allocation8 + $0x80] ss:$12 sps:$4 sm:$0xff]  }
 0x6be   :  { %2455 = vmatprep.subr.bf16.mxu0 %v4100_v7  ;;  %v3517_v7 = vld [vmem:[#allocation8 + $0x98] ss:$12 sps:$4 sm:$0xff]  }
 0x6bf   :  { %3317 = vmatpush3.bf16.msra.mxu1 %v3513_v60 }
 0x6c0   :  { %3318 = vmatprep.subr.bf16.mxu1 %v3788_v49 }
 0x6c1   :  { %2456 = vmatpush1.bf16.msra.mxu0 %v4103_v8  ;;  %v3518_v8 = vld [vmem:[#allocation8 + $0xb0] ss:$12 sps:$4 sm:$0xff]  }
 0x6c2   :  { %2457 = vmatprep.subr.bf16.mxu0 %v4107_v13 }
 0x6c3   :  { %3319 = vmatpush3.bf16.msra.mxu1 %v3514_v62 }
 0x6c4   :  { %3320 = vmatprep.subr.bf16.mxu1 %v3788_v49 }
 0x6c5   :  { %2458 = vmatpush1.bf16.msra.mxu0 %v4110_v14 }
 0x6c6   :  { %2459 = vmatprep.subr.bf16.mxu0 %v4113_v18 }
 0x6c7   :  { %3321 = vmatpush3.bf16.msra.mxu1 %v3515_v2 }
 0x6c8   :  { %3322 = vmatprep.subr.bf16.mxu1 %v3788_v49 }
 0x6c9   :  { %2460 = vmatpush1.bf16.msra.mxu0 %v4116_v21 }
 0x6ca   :  { %2461 = vmatprep.subr.bf16.mxu0 %v4155_v1 }
 0x6cb   :  { %3323 = vmatpush3.bf16.msra.mxu1 %v3516_v20 }
 0x6cc   :  { %3324 = vmatprep.subr.bf16.mxu1 %v3788_v49 }
 0x6cd   :  { %2462 = vmatpush1.bf16.msra.mxu0 %v4153_v32 }
 0x6ce   :  { %2463 = vmatprep.subr.bf16.mxu0 %v4157_v3 }
 0x6cf   :  { %3325 = vmatpush3.bf16.msra.mxu1 %v3517_v7 }
 0x6d0   :  { %3326 = vmatprep.subr.bf16.mxu1 %v3788_v49 }
 0x6d1   :  { %2464 = vmatpush1.bf16.msra.mxu0 %v4162_v10 }
 0x6d2   :  { %3332 = vmatprep.subr.bf16.mxu0 %v3519_v16 }
 0x6d3   :  { %3327 = vmatpush3.bf16.msra.mxu1 %v3518_v8 }
 0x787   :  { %v2218_v13 = vpop.f32.mrb[24].mxu0  ;;  %v2259_v14 = vpop.f32.mrb[48].mxu1 }
 0x788   :  { %v2265_v18 = vadd.f32 %v2218_v13, %v4017_v56  ;;  %v2220_v21 = vpop.f32.mrb[25].mxu0  ;;  %v3310_v32 = vpop.f32.mrb[49].mxu1 }
 0x789   :  { %v2272_v1 = vadd.f32 %v2220_v21, %v4019_v59  ;;  %v2222_v3 = vpop.f32.mrb[26].mxu0  ;;  %v2262_v10 = vpop.f32.mrb[50].mxu1 }
 0x78a   :  { %v2223_v58 = vpop.f32.mrb[27].mxu0  ;;  %v3311_v45 = vpop.f32.mrb[51].mxu1  ;;  %v2989_v5 = vmul.f32 -1.442695, %v2265_v18 }
 0x78b   :  { %v2990_v26 = vmul.f32 -1.442695, %v2272_v1 }
 0x78d   :  { %3591 = vpow2.f32 %v2990_v26 }
 0x78e   :  { %3593 = vpow2.f32 %v2989_v5 }
 0x797   :  { %v3592_v4 = vpop.eup %3591 }
 0x798   :  { %v2276_v17 = vadd.f32 1.0, %v3592_v4  ;;  %v3594_v49 = vpop.eup %3593 }
 0x799   :  { %v2269_v29 = vadd.f32 1.0, %v3594_v49 }
 0x79a   :  { %3595 = vrcp.f32 %v2276_v17 }
 0x79b   :  { %3597 = vrcp.f32 %v2269_v29 }
 0x7a4   :  { %v3596_v9 = vpop.eup %3595 }
 0x7a5   :  { %v2279_v56 = vmul.f32 %v3596_v9, %v2259_v14  ;;  %v3598_v59 = vpop.eup %3597 }
 0x7a6   :  { %v2282_v19 = vsub.f32 1.0, %v3598_v59  ;;  %v2284_v22 = vmul.f32 %v3598_v59, %v4244_v43 }
 0x7a7   :  { %v2280_v57 = vadd.f32 %v2279_v56, %v4031_v24  ;;  %v3522_v24 = vld [vmem:[#allocation9 + $0x10] sm:$0xff]  }
 0x7a9   :  { %3599 = vtanh.f32 %v2280_v57 }
 0x7b3   :  { %v3600_v11 = vpop.eup %3599 }
 0x7b4   :  { %v2283_v23 = vmul.f32 %v3600_v11, %v2282_v19 }
 0x7b6   :  { %v4277_v27 = vadd.f32 %v2284_v22, %v2283_v23 }
 0x7b8   :  { %v2286_v28 = vpack.c.bf16 %v4277_v27, %v4277_v27 }
 0x7ba   :  { %2288 = vst [vmem:[#allocation11 + $0x18] sm:$0xf] %v2286_v28  ;;  %2482 = vmatmul.mubr.bf16.vlgmr.msra.gmra.mrb[28].mxu0 %v2286_v28  ;;  %3329 = vmatmul.mubr.bf16.vlgmr.msra.gmra.mrb[52].mxu1 %v2286_v28 }
 0x7bb   :  { %3333 = vmatpush3.bf16.msra.mxu0 %v3519_v16  ;;  %3348 = vmatprep.mubr.bf16.mxu0 %v3520_v12 }
 0x7bc   :  { %3334 = vmatprep.subr.bf16.mxu0 %v3521_v15 }
 0x7bf   :  { %3335 = vmatpush3.bf16.msra.mxu0 %v3521_v15 }
 0x7c0   :  { %3336 = vmatprep.subr.bf16.mxu0 %v3522_v24 }
 0x7c3   :  { %3337 = vmatpush3.bf16.msra.mxu0 %v3522_v24 }
 0x7c4   :  { %3338 = vmatprep.subr.bf16.mxu0 %v3523_v30 }
 0x7c7   :  { %3339 = vmatpush3.bf16.msra.mxu0 %v3523_v30 }
 0x7c8   :  { %3340 = vmatprep.subr.bf16.mxu0 %v3524_v34 }
 0x7cb   :  { %3341 = vmatpush3.bf16.msra.mxu0 %v3524_v34 }
 0x7cc   :  { %3342 = vmatprep.subr.bf16.mxu0 %v3525_v37 }
 0x7cf   :  { %3343 = vmatpush3.bf16.msra.mxu0 %v3525_v37 }
 0x7d0   :  { %3344 = vmatprep.subr.bf16.mxu0 %v3526_v31 }
 0x7d3   :  { %3345 = vmatpush3.bf16.msra.mxu0 %v3526_v31 }
 0x7d4   :  { %3346 = vmatprep.subr.bf16.mxu0 %v3527_v38 }
 0x7d7   :  { %3347 = vmatpush3.bf16.msra.mxu0 %v3527_v38 }
 0x7da   :  { %3349 = vmatmul.mubr.bf16.vlgmr.msra.gmra.mrb[32].mxu0 %v3528_v40 }
 0x7db   :  { %3352 = vmatprep.mubr.bf16.mxu0 %v3529_v42 }
 0x88d   :  { %v2483_v44 = vpop.f32.mrb[28].mxu0  ;;  %v2524_v25 = vpop.f32.mrb[52].mxu1 }
 0x88e   :  { %v2530_v35 = vadd.f32 %v2483_v44, %v4021_v61  ;;  %v2485_v46 = vpop.f32.mrb[29].mxu0  ;;  %v3330_v33 = vpop.f32.mrb[53].mxu1 }
 0x88f   :  { %v2537_v48 = vadd.f32 %v2485_v46, %v4023_v63  ;;  %v2487_v51 = vpop.f32.mrb[30].mxu0  ;;  %v2527_v52 = vpop.f32.mrb[54].mxu1 }
 0x890   :  { %v2488_v53 = vpop.f32.mrb[31].mxu0  ;;  %v3331_v54 = vpop.f32.mrb[55].mxu1  ;;  %v3015_v55 = vmul.f32 -1.442695, %v2530_v35 }
 0x891   :  { %v3016_v39 = vmul.f32 -1.442695, %v2537_v48 }
 0x893   :  { %3601 = vpow2.f32 %v3016_v39 }
 0x894   :  { %3603 = vpow2.f32 %v3015_v55 }
 0x89d   :  { %v3602_v41 = vpop.eup %3601 }
 0x89e   :  { %v2541_v47 = vadd.f32 1.0, %v3602_v41  ;;  %v3604_v43 = vpop.eup %3603 }
 0x89f   :  { %v2534_v50 = vadd.f32 1.0, %v3604_v43 }
 0x8a0   :  { %3605 = vrcp.f32 %v2541_v47 }
 0x8a1   :  { %3607 = vrcp.f32 %v2534_v50 }
 0x8aa   :  { %v3606_v0 = vpop.eup %3605 }
 0x8ab   :  { %v2544_v61 = vmul.f32 %v3606_v0, %v2524_v25  ;;  %v3608_v7 = vpop.eup %3607 }
 0x8ac   :  { %v2547_v8 = vsub.f32 1.0, %v3608_v7  ;;  %v2549_v14 = vmul.f32 %v3608_v7, %v4277_v27 }
 0x8ad   :  { %v2545_v36 = vadd.f32 %v2544_v61, %v4035_v6  ;;  %v3350_v60 = vpop.f32.mrb[32].mxu0 }
 0x8ae   :  { %v2686_v63 = vpop.f32.mrb[33].mxu0 }
 0x8af   :  { %3609 = vtanh.f32 %v2545_v36  ;;  %v3351_v62 = vpop.f32.mrb[34].mxu0 }
 0x8b0   :  { %v3037_v2 = vpack.c.bf16 %v3351_v62, %v3350_v60  ;;  %v2689_v16 = vpop.f32.mrb[35].mxu0 }
 0x8b1   :  { %v3032_v20 = vpack.c.bf16 %v2689_v16, %v2686_v63 }
 0x8b2   :  { %3049 = vst [vmem:[#allocation14 + $0x8] sm:$0xff] %v3037_v2  }
 0x8b3   :  { %3033 = vst [vmem:[#allocation14] sm:$0xff] %v3032_v20  }
 0x8b9   :  { %v3610_v13 = vpop.eup %3609 }
 0x8ba   :  { %v2548_v18 = vmul.f32 %v3610_v13, %v2547_v8 }
 0x8bc   :  { %v2550_v21 = vadd.f32 %v2549_v14, %v2548_v18 }
 0x8be   :  { %v2551_v32 = vpack.c.bf16 %v2550_v21, %v2550_v21  ;;  %2555 = vst [vmem:[#allocation12] sm:$0xff] %v2550_v21 }
 0x8c0   :  { %2553 = vst [vmem:[#allocation11 + $0x1c] sm:$0xf] %v2551_v32 }
 0x8c7   :  { %v3530_v6 = vld [vmem:[#allocation11 + $0x18] sm:$0xff]  }
 0x8c8   :  { %3353 = vmatmul.mubr.bf16.gmra.mrb[36].mxu0 %v3530_v6 }
 0x8c9   :  { %3713 = shalt.err (!%p3710_p8)
}
 0x8ca   :  { %s3714_s14 = scalar_lea.hbm %s4333_s6, 128 }
 0x8cb   :  { %p3715_p9 = scmp.ne.s32.totalorder %s4333_s6, %s3714_s14  ;;  %p3718_p10 = scmp.lt.u32.totalorder %s3714_s14, %s4333_s6 }
 0x8cd   :  { %p3720_p11 = pnand %p3718_p10, %p3715_p9 }
 0x8cf   :  { %3723 = shalt.err (!%p3720_p11)
}
 0x8d0   :  { %2754 = dma.vmem_to_hbm [thread:$0]  %s2752_s29, 128, %s4333_s6, [#allocation13]  }
 0x8d1   :  { %s3724_s20 = scalar_lea.vmem %s2739_s8, 512  ;;  %p3729_p13 = scmp.lt.s32.totalorder %s2739_s8, %s2739_s8 }
 0x8d2   :  { %p3725_p12 = scmp.ne.s32.totalorder %s2739_s8, %s3724_s20  ;;  %p3730_p0 = scmp.lt.s32.totalorder %s3724_s20, %s3724_s20 }
 0x8d4   :  { %p3731_p1 = por %p3730_p0, %p3729_p13 }
 0x8d6   :  { %p3732_p2 = pnand %p3731_p1, %p3725_p12 }
 0x8d8   :  { %3735 = shalt.err (!%p3732_p2)
}
 0x8d9   :  { %s3736_s23 = scalar_lea.hbm %s4332_s5, 512 }
 0x8da   :  { %p3737_p3 = scmp.ne.s32.totalorder %s4332_s5, %s3736_s23  ;;  %p3740_p4 = scmp.lt.u32.totalorder %s3736_s23, %s4332_s5 }
 0x8dc   :  { %p3742_p5 = pnand %p3740_p4, %p3737_p3 }
 0x8de   :  { %3745 = shalt.err (!%p3742_p5)
}
 0x8df   :  { %2744 = dma.vmem_to_hbm [thread:$0]  %s2739_s8, 512, %s4332_s5, [#allocation5], %s3782_s1, %s3782_s1, %s3783_s25  }
 0x8e0   :  { %s3792_s11 = smov [#allocation14]  }
 0x8e1   :  { %s2760_s4 = sshll.u32 %s3792_s11, 4  ;;  %s2761_s4 = int_to_ptr.vmem [resolvable:$true] %s2760_s4 }
 0x8e2   :  { %s3746_s12 = scalar_lea.vmem %s2761_s4, 512  ;;  %p3751_p7 = scmp.lt.s32.totalorder %s2761_s4, %s2761_s4 }
 0x8e3   :  { %p3747_p6 = scmp.ne.s32.totalorder %s2761_s4, %s3746_s12  ;;  %p3752_p8 = scmp.lt.s32.totalorder %s3746_s12, %s3746_s12 }
 0x8e5   :  { %p3753_p9 = por %p3752_p8, %p3751_p7 }
 0x8e7   :  { %p3754_p10 = pnand %p3753_p9, %p3747_p6 }
 0x99b   :  { %v3354_v1 = vpop.f32.mrb[36].mxu0 }
 0x99c   :  { %v2702_v3 = vpop.f32.mrb[37].mxu0 }
 0x99d   :  { %v3355_v10 = vpop.f32.mrb[38].mxu0 }
 0x99e   :  { %v3047_v58 = vpack.c.bf16 %v3355_v10, %v3354_v1  ;;  %v2705_v45 = vpop.f32.mrb[39].mxu0 }
 0x99f   :  { %v3042_v26 = vpack.c.bf16 %v2705_v45, %v2702_v3 }
 0x9a0   :  { %3051 = vst [vmem:[#allocation14 + $0x18] sm:$0xff] %v3047_v58  }
 0x9a1   :  { %3050 = vst [vmem:[#allocation14 + $0x10] sm:$0xff] %v3042_v26  }
 0x9a2   :  { %3757 = shalt.err (!%p3754_p10)
}
 0x9a3   :  { %s3758_s29 = scalar_lea.hbm %s4334_s7, 512 }
 0x9a4   :  { %p3759_p11 = scmp.ne.s32.totalorder %s4334_s7, %s3758_s29  ;;  %p3762_p12 = scmp.lt.u32.totalorder %s3758_s29, %s4334_s7 }
 0x9a6   :  { %p3764_p13 = pnand %p3762_p12, %p3759_p11 }
 0x9a8   :  { %3767 = shalt.err (!%p3764_p13)
}
 0x9a9   :  { %2766 = dma.vmem_to_hbm [thread:$0]  %s2761_s4, 512, %s4334_s7, [#allocation13], %s3782_s1, %s3782_s1, %s3783_s25  }
 0x9aa   :  { %3774 = dma.done.wait [#allocation5], 512  }
 0x9ab   :  { %3775 = vsyncadd [#allocation5], 4294966784 }
 0x9ac   :  { %3776 = dma.done.wait [#allocation13], 640  }
 0x9ad   :  { %3777 = vsyncadd [#allocation13], 4294966656 }
 0x9ae   :  { %2776 = vsyncpa [#allocation4], 1 }
 0x9af   :  { %2777 = vsyncpa [#allocation7], 1 }
 0x9b0   :  { %2778 = vsyncpa [#allocation10], 1 }
 0x9b1   :  { %2779 = vsyncpa [#allocation5], 1 }
 0x9b2   :  { %2780 = vsyncpa [#allocation13], 1 }

</bundles_post_ra>
